<compile_context>
chip_gen: v7x
topology: tpu7x:2x2x1
jax: 0.10.0
libtpu: 0.0.40
codegen_flags: <defaults>
</compile_context>

<pallas_src>
import math
import numpy as np
import jax
import jax.numpy as jnp
from jax.experimental import pallas as pl
from jax.experimental.pallas import tpu as pltpu

# ---------------- configuration (small, consistent with the module) ----------
B = 2             # batch
N_NODE = 8        # num_electrodes
C_IN = 16         # in_channels
C_OUT = 32        # out_channels (= d_model = dim_feedforward)
N_HEAD = 2
N_LAYERS = 2
D_HEAD = C_OUT // N_HEAD
BN = B * N_NODE
HEAD_PAD = 128    # fc (2) + cl_fc (C_OUT) outputs, zero-padded to a full 128-lane slab
LN_EPS = 1e-5
NEG_BIG = -1e9

# packed-slab row offsets -------------------------------------------------------
W_LAYER_ROWS = 4 * C_OUT                 # wqkv(32) + wo(32) + w1(32) + w2(32) = 128 rows
W_HEAD_OFF = C_IN + N_LAYERS * W_LAYER_ROWS          # 272
W_ROWS = W_HEAD_OFF + N_NODE * C_OUT                 # 528
V_LAYER_ROWS = 8                          # bqkv, ob, b1, b2, g1, be1, g2, be2
V_HB_OFF = 1 + N_LAYERS * V_LAYER_ROWS               # 17
V_ROWS = V_HB_OFF + 1                                 # 18


def _layernorm(x, gamma, beta):
    mean = jnp.mean(x, axis=-1, keepdims=True)
    var = jnp.mean((x - mean) ** 2, axis=-1, keepdims=True)
    return (x - mean) * jax.lax.rsqrt(var + LN_EPS) * gamma + beta


# ---------------- single fused kernel ----------------------------------------
def fused_kernel(x_ref, w_ref, v_ref, out_ref):
    f32 = jnp.float32

    x = x_ref[...].astype(f32)                         # (BN, C_in), node-major rows n*B + b
    vecs = v_ref[...]                                  # (18, 128) small vectors

    # ---- input projection ----
    wp = w_ref[0:C_IN, 0:C_OUT]                        # (C_in, C)
    bp = vecs[0:1, 0:C_OUT]
    h = jnp.dot(x, wp, preferred_element_type=f32) + bp                     # (BN, C)

    # ---- block-diagonal attention bias built in-kernel (node-major stacking:
    #      rows r, r' belong to the same batch element iff r % B == r' % B) ----
    row = jax.lax.broadcasted_iota(jnp.int32, (BN, BN), 0)
    col = jax.lax.broadcasted_iota(jnp.int32, (BN, BN), 1)
    attn_bias = jnp.where((row % B) == (col % B), 0.0, NEG_BIG).astype(f32)  # (BN, BN)

    for l in range(N_LAYERS):                          # static unroll
        wbase = C_IN + l * W_LAYER_ROWS
        vbase = 1 + l * V_LAYER_ROWS
        wqkv = w_ref[wbase:wbase + C_OUT, 0:3 * C_OUT]                 # (C, 3C)
        wo = w_ref[wbase + C_OUT:wbase + 2 * C_OUT, 0:C_OUT]           # (C, C)
        w1 = w_ref[wbase + 2 * C_OUT:wbase + 3 * C_OUT, 0:C_OUT]       # (C, C)
        w2 = w_ref[wbase + 3 * C_OUT:wbase + 4 * C_OUT, 0:C_OUT]       # (C, C)
        bqkv = vecs[vbase + 0:vbase + 1, 0:3 * C_OUT]
        ob = vecs[vbase + 1:vbase + 2, 0:C_OUT]
        b1 = vecs[vbase + 2:vbase + 3, 0:C_OUT]
        b2 = vecs[vbase + 3:vbase + 4, 0:C_OUT]
        g1 = vecs[vbase + 4:vbase + 5, 0:C_OUT]
        be1 = vecs[vbase + 5:vbase + 6, 0:C_OUT]
        g2 = vecs[vbase + 6:vbase + 7, 0:C_OUT]
        be2 = vecs[vbase + 7:vbase + 8, 0:C_OUT]

        # ---- fused QKV projection (single MXU push; q pre-scaled by 1/sqrt(Dh)) ----
        qkv = jnp.dot(h, wqkv, preferred_element_type=f32) + bqkv      # (BN, 3C)

        heads = []
        for hd in range(N_HEAD):                       # static unroll, lane slices only
            q = qkv[:, hd * D_HEAD:(hd + 1) * D_HEAD]
            k = qkv[:, C_OUT + hd * D_HEAD:C_OUT + (hd + 1) * D_HEAD]
            v = qkv[:, 2 * C_OUT + hd * D_HEAD:2 * C_OUT + (hd + 1) * D_HEAD]
            s = jax.lax.dot_general(q, k, (((1,), (1,)), ((), ())),
                                    preferred_element_type=f32)        # (BN, BN)
            s = s + attn_bias                          # keep batches independent
            s = s - jnp.max(s, axis=-1, keepdims=True)
            p = jnp.exp(s)
            p = p * pl.reciprocal(jnp.sum(p, axis=-1, keepdims=True), approx=True)
            heads.append(jnp.dot(p, v, preferred_element_type=f32))    # (BN, Dh)

        # ---- fused per-head output projection (one (C,C) matmul) ----
        o_cat = jnp.concatenate(heads, axis=1)                         # (BN, C)
        attn = jnp.dot(o_cat, wo, preferred_element_type=f32) + ob
        # ---- add & norm 1 ----
        h = _layernorm(h + attn, g1, be1)
        # ---- feed-forward ----
        ff = jnp.maximum(jnp.dot(h, w1, preferred_element_type=f32) + b1, 0.0)
        ff = jnp.dot(ff, w2, preferred_element_type=f32) + b2
        # ---- add & norm 2 ----
        h = _layernorm(h + ff, g2, be2)

    # ---- fused fc + cl_fc head: flatten per batch (torch order) via lane concat of
    #      contiguous per-node (B, C) slices, then ONE (B, N*C)@(N*C, 128) GEMM ----
    flat = jnp.concatenate([h[n * B:(n + 1) * B, :] for n in range(N_NODE)],
                           axis=1)                                     # (B, N*C) = (2, 256)
    head_w = w_ref[W_HEAD_OFF:W_HEAD_OFF + N_NODE * C_OUT, :]          # (N*C, 128)
    hb = vecs[V_HB_OFF:V_HB_OFF + 1, :]                                # (1, 128)
    head = jnp.dot(flat, head_w, preferred_element_type=f32) + hb      # (B, 128)

    # ---- single lane-dense output store: rows 0:BN = emb (padded), rows BN:BN+B = head ----
    h_pad = jnp.concatenate([h, jnp.zeros((BN, HEAD_PAD - C_OUT), dtype=f32)], axis=1)
    out_ref[...] = jnp.concatenate([h_pad, head], axis=0).astype(out_ref.dtype)


# ---------------- wrapper -----------------------------------------------------
def dgcnn_former_forward(x, kp, if_cl=False):
    """Mirrors DGCNN_encoder_moco_former.forward with one fused Pallas kernel."""
    # node-major row stacking: row n*B + b holds x[b, n, :]
    xf = jnp.transpose(x, (1, 0, 2)).reshape(BN, C_IN)
    vmem = pl.BlockSpec(memory_space=pltpu.MemorySpace.VMEM)
    out = pl.pallas_call(
        fused_kernel,
        out_shape=jax.ShapeDtypeStruct((BN + B, HEAD_PAD), jnp.float32),
        in_specs=[vmem, vmem, vmem],
        out_specs=vmem,
        cost_estimate=pl.CostEstimate(flops=610_000, transcendentals=1_200,
                                      bytes_accessed=290_000),
    )(xf, kp['wbig'], kp['vecs'])

    emb2d = out[0:BN, 0:C_OUT]                                         # node-major rows
    graph_emb = emb2d.reshape(N_NODE, B, C_OUT).transpose(1, 0, 2)     # (B, N, C)
    head = out[BN:BN + B, :]
    logits = head[:, 0:2]
    cl_emb = head[:, 2:2 + C_OUT]
    emb = cl_emb if if_cl else graph_emb
    return logits, graph_emb, emb, emb


# ---------------- parameter packing (done once, outside the hot path) ---------
def pack_params(p):
    scale = 1.0 / math.sqrt(D_HEAD)

    # big (528, 128) weight slab: wp | per-layer [wqkv | wo | w1 | w2] | head (fc ++ cl_fc)
    wbig = np.zeros((W_ROWS, HEAD_PAD), np.float32)
    wbig[0:C_IN, 0:C_OUT] = np.asarray(p['wp'])
    for l in range(N_LAYERS):
        base = C_IN + l * W_LAYER_ROWS
        inw = np.asarray(p['inw'][l]).copy()
        inw[:, 0:C_OUT] *= scale                       # fold 1/sqrt(Dh) into Wq (offline)
        wbig[base:base + C_OUT, 0:3 * C_OUT] = inw
        wbig[base + C_OUT:base + 2 * C_OUT, 0:C_OUT] = np.asarray(p['ow'][l])
        wbig[base + 2 * C_OUT:base + 3 * C_OUT, 0:C_OUT] = np.asarray(p['w1'][l])
        wbig[base + 3 * C_OUT:base + 4 * C_OUT, 0:C_OUT] = np.asarray(p['w2'][l])
    wbig[W_HEAD_OFF:W_HEAD_OFF + N_NODE * C_OUT, 0:2] = np.asarray(p['fcw'])
    wbig[W_HEAD_OFF:W_HEAD_OFF + N_NODE * C_OUT, 2:2 + C_OUT] = np.asarray(p['clw'])

    # small (18, 128) vector slab: bp | per-layer [bqkv ob b1 b2 g1 be1 g2 be2] | head bias
    vecs = np.zeros((V_ROWS, HEAD_PAD), np.float32)
    vecs[0, 0:C_OUT] = np.asarray(p['bp'][0])
    for l in range(N_LAYERS):
        vb = 1 + l * V_LAYER_ROWS
        inb = np.asarray(p['inb'][l]).copy()
        inb[0:C_OUT] *= scale                          # fold 1/sqrt(Dh) into bq (offline)
        vecs[vb + 0, 0:3 * C_OUT] = inb
        vecs[vb + 1, 0:C_OUT] = np.asarray(p['ob'][l])
        vecs[vb + 2, 0:C_OUT] = np.asarray(p['b1'][l])
        vecs[vb + 3, 0:C_OUT] = np.asarray(p['b2'][l])
        vecs[vb + 4, 0:C_OUT] = np.asarray(p['g1'][l])
        vecs[vb + 5, 0:C_OUT] = np.asarray(p['be1'][l])
        vecs[vb + 6, 0:C_OUT] = np.asarray(p['g2'][l])
        vecs[vb + 7, 0:C_OUT] = np.asarray(p['be2'][l])
    vecs[V_HB_OFF, 0:2] = np.asarray(p['fcb'][0])
    vecs[V_HB_OFF, 2:2 + C_OUT] = np.asarray(p['clb'][0])

    return {'wbig': jnp.asarray(wbig), 'vecs': jnp.asarray(vecs)}


# ---------------- deterministic parameter init --------------------------------
def init_params(key):
    ks = jax.random.split(key, 20)

    def nrm(k, shape, s=0.1):
        return (s * jax.random.normal(k, shape)).astype(jnp.float32)

    p = {}
    p['wp'] = nrm(ks[0], (C_IN, C_OUT))                       # input_proj (pre-transposed)
    p['bp'] = nrm(ks[1], (1, C_OUT), 0.05)
    p['inw'] = nrm(ks[2], (N_LAYERS, C_OUT, 3 * C_OUT))       # MHA in_proj
    p['inb'] = nrm(ks[3], (N_LAYERS, 3 * C_OUT), 0.05)
    p['ow'] = nrm(ks[4], (N_LAYERS, C_OUT, C_OUT))            # MHA out_proj
    p['ob'] = nrm(ks[5], (N_LAYERS, C_OUT), 0.05)
    p['w1'] = nrm(ks[6], (N_LAYERS, C_OUT, C_OUT))            # FFN linear1
    p['b1'] = nrm(ks[7], (N_LAYERS, C_OUT), 0.05)
    p['w2'] = nrm(ks[8], (N_LAYERS, C_OUT, C_OUT))            # FFN linear2
    p['b2'] = nrm(ks[9], (N_LAYERS, C_OUT), 0.05)
    p['g1'] = 1.0 + nrm(ks[10], (N_LAYERS, C_OUT), 0.05)      # LayerNorm1
    p['be1'] = nrm(ks[11], (N_LAYERS, C_OUT), 0.05)
    p['g2'] = 1.0 + nrm(ks[12], (N_LAYERS, C_OUT), 0.05)      # LayerNorm2
    p['be2'] = nrm(ks[13], (N_LAYERS, C_OUT), 0.05)
    p['fcw'] = nrm(ks[14], (N_NODE * C_OUT, 2))               # fc
    p['fcb'] = nrm(ks[15], (1, 2), 0.05)
    p['clw'] = nrm(ks[16], (N_NODE * C_OUT, C_OUT))           # cl_fc
    p['clb'] = nrm(ks[17], (1, C_OUT), 0.05)
    # Unused-in-forward parameters (kept for fidelity with __init__): A, BN1.
    p['A'] = (0.01 + 0.49 * jax.random.uniform(ks[18], (N_NODE, N_NODE))).astype(jnp.float32)
    return p


# ---------------- pure-JAX reference (for correctness check) -----------------
def reference_forward(x, p):
    h = x @ p['wp'] + p['bp'][0]
    for l in range(N_LAYERS):
        qkv = h @ p['inw'][l] + p['inb'][l]
        q, k, v = jnp.split(qkv, 3, axis=-1)

        def split_heads(t):
            return t.reshape(B, N_NODE, N_HEAD, D_HEAD).transpose(0, 2, 1, 3)

        qh, kh, vh = map(split_heads, (q, k, v))
        s = jnp.einsum('bhnd,bhmd->bhnm', qh, kh) / math.sqrt(D_HEAD)
        attn = jax.nn.softmax(s, axis=-1)
        a = jnp.einsum('bhnm,bhmd->bhnd', attn, vh)
        a = a.transpose(0, 2, 1, 3).reshape(B, N_NODE, C_OUT)
        a = a @ p['ow'][l] + p['ob'][l]
        h = _layernorm(h + a, p['g1'][l], p['be1'][l])
        ff = jax.nn.relu(h @ p['w1'][l] + p['b1'][l]) @ p['w2'][l] + p['b2'][l]
        h = _layernorm(h + ff, p['g2'][l], p['be2'][l])
    flat = h.reshape(B, -1)
    logits = flat @ p['fcw'] + p['fcb'][0]
    cl = flat @ p['clw'] + p['clb'][0]
    return logits, h, cl


# ---------------- main --------------------------------------------------------
if __name__ == "__main__":
    key = jax.random.PRNGKey(0)
    kx, kparam = jax.random.split(key)
    x = jax.random.normal(kx, (B, N_NODE, C_IN), dtype=jnp.float32)
    params = init_params(kparam)
    kparams = pack_params(params)

    # if_cl = False path
    logits, graph_emb, emb, emb2 = dgcnn_former_forward(x, kparams, if_cl=False)
    jax.block_until_ready((logits, graph_emb, emb, emb2))

    # if_cl = True path (cl_fc head, computed in the same fused kernel)
    logits_cl, _, cl_emb, _ = dgcnn_former_forward(x, kparams, if_cl=True)
    jax.block_until_ready((logits_cl, cl_emb))

    # correctness vs pure-JAX reference (tolerance covers the approximate EUP
    # reciprocal used for the softmax normalization and default-precision MXU dots)
    ref_logits, ref_emb, ref_cl = reference_forward(x, params)
    assert logits.shape == (B, 2)
    assert graph_emb.shape == (B, N_NODE, C_OUT)
    assert cl_emb.shape == (B, C_OUT)
    assert np.allclose(np.asarray(graph_emb), np.asarray(ref_emb), rtol=2e-2, atol=2e-2)
    assert np.allclose(np.asarray(logits), np.asarray(ref_logits), rtol=2e-2, atol=2e-2)
    assert np.allclose(np.asarray(logits_cl), np.asarray(ref_logits), rtol=2e-2, atol=2e-2)
    assert np.allclose(np.asarray(cl_emb), np.asarray(ref_cl), rtol=2e-2, atol=2e-2)
    assert np.allclose(np.asarray(emb), np.asarray(graph_emb))

    print("KERNEL_OK")
</pallas_src>

<mosaic_0001>
module attributes {stable_mosaic.version = 11 : i64} {
  func.func @fused_kernel(%arg0: memref<16x16xf32, #tpu.memory_space<vmem>>, %arg1: memref<528x128xf32, #tpu.memory_space<vmem>>, %arg2: memref<18x128xf32, #tpu.memory_space<vmem>>, %arg3: memref<18x128xf32, #tpu.memory_space<vmem>>) attributes {dimension_semantics = [], scalar_prefetch = 0 : i64, scratch_operands = 0 : i64, tpu.core_type = #tpu.core_type<tc>} {
    %c0 = arith.constant 0 : index
    %c0_0 = arith.constant 0 : index
    %0 = vector.load %arg0[%c0, %c0_0] : memref<16x16xf32, #tpu.memory_space<vmem>>, vector<16x16xf32>
    %c0_1 = arith.constant 0 : index
    %c0_2 = arith.constant 0 : index
    %1 = vector.load %arg2[%c0_1, %c0_2] : memref<18x128xf32, #tpu.memory_space<vmem>>, vector<18x128xf32>
    %c0_3 = arith.constant 0 : index
    %c0_4 = arith.constant 0 : index
    %2 = vector.load %arg1[%c0_3, %c0_4] : memref<528x128xf32, #tpu.memory_space<vmem>>, vector<16x32xf32>
    %3 = vector.extract_strided_slice %1 {offsets = [0, 0], sizes = [1, 32], strides = [1, 1]} : vector<18x128xf32> to vector<1x32xf32>
    %cst = arith.constant dense<0.000000e+00> : vector<16x32xf32>
    %4 = tpu.matmul %0, %2, %cst {dimension_numbers = #tpu.dot_dimension_numbers<[1], [0], [0], [1], [0, 0, 1, 1], [], []>} : vector<16x16xf32>, vector<16x32xf32>, vector<16x32xf32> -> vector<16x32xf32>
    %5 = vector.broadcast %3 : vector<1x32xf32> to vector<16x32xf32>
    %6 = arith.addf %4, %5 : vector<16x32xf32>
    %7 = tpu.iota {dimensions = array<i32: 0>} : vector<16x16xi32>
    %8 = tpu.iota {dimensions = array<i32: 1>} : vector<16x16xi32>
    %c2_i32 = arith.constant 2 : i32
    %c0_i32 = arith.constant 0 : i32
    %9 = arith.cmpi eq, %c2_i32, %c0_i32 : i32
    %c1_i32 = arith.constant 1 : i32
    %10 = arith.select %9, %c1_i32, %c2_i32 : i32
    %11 = vector.broadcast %10 : i32 to vector<16x16xi32>
    %12 = arith.remsi %7, %11 : vector<16x16xi32>
    %c0_i32_5 = arith.constant 0 : i32
    %13 = vector.broadcast %c0_i32_5 : i32 to vector<16x16xi32>
    %14 = arith.cmpi ne, %12, %13 : vector<16x16xi32>
    %c0_i32_6 = arith.constant 0 : i32
    %15 = vector.broadcast %c0_i32_6 : i32 to vector<16x16xi32>
    %16 = arith.cmpi slt, %12, %15 : vector<16x16xi32>
    %c0_i32_7 = arith.constant 0 : i32
    %17 = arith.cmpi slt, %10, %c0_i32_7 : i32
    %18 = vector.broadcast %17 : i1 to vector<16x16xi1>
    %19 = vector.broadcast %18 : vector<16x16xi1> to vector<16x16xi1>
    %20 = arith.xori %16, %19 : vector<16x16xi1>
    %21 = arith.andi %20, %14 : vector<16x16xi1>
    %22 = vector.broadcast %10 : i32 to vector<16x16xi32>
    %23 = arith.addi %12, %22 : vector<16x16xi32>
    %24 = arith.select %21, %23, %12 : vector<16x16xi1>, vector<16x16xi32>
    %c2_i32_8 = arith.constant 2 : i32
    %c0_i32_9 = arith.constant 0 : i32
    %25 = arith.cmpi eq, %c2_i32_8, %c0_i32_9 : i32
    %c1_i32_10 = arith.constant 1 : i32
    %26 = arith.select %25, %c1_i32_10, %c2_i32_8 : i32
    %27 = vector.broadcast %26 : i32 to vector<16x16xi32>
    %28 = arith.remsi %8, %27 : vector<16x16xi32>
    %c0_i32_11 = arith.constant 0 : i32
    %29 = vector.broadcast %c0_i32_11 : i32 to vector<16x16xi32>
    %30 = arith.cmpi ne, %28, %29 : vector<16x16xi32>
    %c0_i32_12 = arith.constant 0 : i32
    %31 = vector.broadcast %c0_i32_12 : i32 to vector<16x16xi32>
    %32 = arith.cmpi slt, %28, %31 : vector<16x16xi32>
    %c0_i32_13 = arith.constant 0 : i32
    %33 = arith.cmpi slt, %26, %c0_i32_13 : i32
    %34 = vector.broadcast %33 : i1 to vector<16x16xi1>
    %35 = vector.broadcast %34 : vector<16x16xi1> to vector<16x16xi1>
    %36 = arith.xori %32, %35 : vector<16x16xi1>
    %37 = arith.andi %36, %30 : vector<16x16xi1>
    %38 = vector.broadcast %26 : i32 to vector<16x16xi32>
    %39 = arith.addi %28, %38 : vector<16x16xi32>
    %40 = arith.select %37, %39, %28 : vector<16x16xi1>, vector<16x16xi32>
    %41 = arith.cmpi eq, %24, %40 : vector<16x16xi32>
    %cst_14 = arith.constant 0.000000e+00 : f32
    %cst_15 = arith.constant -1.000000e+09 : f32
    %42 = vector.broadcast %cst_14 : f32 to vector<16x16xf32>
    %43 = vector.broadcast %cst_15 : f32 to vector<16x16xf32>
    %44 = arith.select %41, %42, %43 : vector<16x16xi1>, vector<16x16xf32>
    %c16 = arith.constant 16 : index
    %c0_16 = arith.constant 0 : index
    %45 = vector.load %arg1[%c16, %c0_16] : memref<528x128xf32, #tpu.memory_space<vmem>>, vector<32x96xf32>
    %c48 = arith.constant 48 : index
    %c0_17 = arith.constant 0 : index
    %46 = vector.load %arg1[%c48, %c0_17] : memref<528x128xf32, #tpu.memory_space<vmem>>, vector<32x32xf32>
    %c80 = arith.constant 80 : index
    %c0_18 = arith.constant 0 : index
    %47 = vector.load %arg1[%c80, %c0_18] : memref<528x128xf32, #tpu.memory_space<vmem>>, vector<32x32xf32>
    %c112 = arith.constant 112 : index
    %c0_19 = arith.constant 0 : index
    %48 = vector.load %arg1[%c112, %c0_19] : memref<528x128xf32, #tpu.memory_space<vmem>>, vector<32x32xf32>
    %49 = vector.extract_strided_slice %1 {offsets = [1, 0], sizes = [1, 96], strides = [1, 1]} : vector<18x128xf32> to vector<1x96xf32>
    %50 = vector.extract_strided_slice %1 {offsets = [2, 0], sizes = [1, 32], strides = [1, 1]} : vector<18x128xf32> to vector<1x32xf32>
    %51 = vector.extract_strided_slice %1 {offsets = [3, 0], sizes = [1, 32], strides = [1, 1]} : vector<18x128xf32> to vector<1x32xf32>
    %52 = vector.extract_strided_slice %1 {offsets = [4, 0], sizes = [1, 32], strides = [1, 1]} : vector<18x128xf32> to vector<1x32xf32>
    %53 = vector.extract_strided_slice %1 {offsets = [5, 0], sizes = [1, 32], strides = [1, 1]} : vector<18x128xf32> to vector<1x32xf32>
    %54 = vector.extract_strided_slice %1 {offsets = [6, 0], sizes = [1, 32], strides = [1, 1]} : vector<18x128xf32> to vector<1x32xf32>
    %55 = vector.extract_strided_slice %1 {offsets = [7, 0], sizes = [1, 32], strides = [1, 1]} : vector<18x128xf32> to vector<1x32xf32>
    %56 = vector.extract_strided_slice %1 {offsets = [8, 0], sizes = [1, 32], strides = [1, 1]} : vector<18x128xf32> to vector<1x32xf32>
    %cst_20 = arith.constant dense<0.000000e+00> : vector<16x96xf32>
    %57 = tpu.matmul %6, %45, %cst_20 {dimension_numbers = #tpu.dot_dimension_numbers<[1], [0], [0], [1], [0, 0, 1, 1], [], []>} : vector<16x32xf32>, vector<32x96xf32>, vector<16x96xf32> -> vector<16x96xf32>
    %58 = vector.broadcast %49 : vector<1x96xf32> to vector<16x96xf32>
    %59 = arith.addf %57, %58 : vector<16x96xf32>
    %60 = vector.extract_strided_slice %59 {offsets = [0, 0], sizes = [16, 16], strides = [1, 1]} : vector<16x96xf32> to vector<16x16xf32>
    %61 = vector.extract_strided_slice %59 {offsets = [0, 32], sizes = [16, 16], strides = [1, 1]} : vector<16x96xf32> to vector<16x16xf32>
    %62 = vector.extract_strided_slice %59 {offsets = [0, 64], sizes = [16, 16], strides = [1, 1]} : vector<16x96xf32> to vector<16x16xf32>
    %cst_21 = arith.constant dense<0.000000e+00> : vector<16x16xf32>
    %63 = tpu.matmul %60, %61, %cst_21 {dimension_numbers = #tpu.dot_dimension_numbers<[1], [1], [0], [0], [0, 0, 1, 0], [], []>} : vector<16x16xf32>, vector<16x16xf32>, vector<16x16xf32> -> vector<16x16xf32>
    %64 = arith.addf %63, %44 : vector<16x16xf32>
    %cst_22 = arith.constant dense<0xFF800000> : vector<16xf32>
    %65 = vector.multi_reduction <maximumf>, %64, %cst_22 [1] : vector<16x16xf32> to vector<16xf32>
    %66 = vector.shape_cast %65 : vector<16xf32> to vector<16x1xf32>
    %67 = vector.broadcast %66 : vector<16x1xf32> to vector<16x16xf32>
    %68 = arith.subf %64, %67 : vector<16x16xf32>
    %69 = math.exp %68 : vector<16x16xf32>
    %cst_23 = arith.constant dense<0.000000e+00> : vector<16xf32>
    %70 = vector.multi_reduction <add>, %69, %cst_23 [1] : vector<16x16xf32> to vector<16xf32>
    %71 = vector.shape_cast %70 : vector<16xf32> to vector<16x1xf32>
    %72 = tpu.reciprocal %71 {approx = true} : vector<16x1xf32> -> vector<16x1xf32>
    %73 = vector.broadcast %72 : vector<16x1xf32> to vector<16x16xf32>
    %74 = arith.mulf %69, %73 : vector<16x16xf32>
    %cst_24 = arith.constant dense<0.000000e+00> : vector<16x16xf32>
    %75 = tpu.matmul %74, %62, %cst_24 {dimension_numbers = #tpu.dot_dimension_numbers<[1], [0], [0], [1], [0, 0, 1, 1], [], []>} : vector<16x16xf32>, vector<16x16xf32>, vector<16x16xf32> -> vector<16x16xf32>
    %76 = vector.extract_strided_slice %59 {offsets = [0, 16], sizes = [16, 16], strides = [1, 1]} : vector<16x96xf32> to vector<16x16xf32>
    %77 = vector.extract_strided_slice %59 {offsets = [0, 48], sizes = [16, 16], strides = [1, 1]} : vector<16x96xf32> to vector<16x16xf32>
    %78 = vector.extract_strided_slice %59 {offsets = [0, 80], sizes = [16, 16], strides = [1, 1]} : vector<16x96xf32> to vector<16x16xf32>
    %cst_25 = arith.constant dense<0.000000e+00> : vector<16x16xf32>
    %79 = tpu.matmul %76, %77, %cst_25 {dimension_numbers = #tpu.dot_dimension_numbers<[1], [1], [0], [0], [0, 0, 1, 0], [], []>} : vector<16x16xf32>, vector<16x16xf32>, vector<16x16xf32> -> vector<16x16xf32>
    %80 = arith.addf %79, %44 : vector<16x16xf32>
    %cst_26 = arith.constant dense<0xFF800000> : vector<16xf32>
    %81 = vector.multi_reduction <maximumf>, %80, %cst_26 [1] : vector<16x16xf32> to vector<16xf32>
    %82 = vector.shape_cast %81 : vector<16xf32> to vector<16x1xf32>
    %83 = vector.broadcast %82 : vector<16x1xf32> to vector<16x16xf32>
    %84 = arith.subf %80, %83 : vector<16x16xf32>
    %85 = math.exp %84 : vector<16x16xf32>
    %cst_27 = arith.constant dense<0.000000e+00> : vector<16xf32>
    %86 = vector.multi_reduction <add>, %85, %cst_27 [1] : vector<16x16xf32> to vector<16xf32>
    %87 = vector.shape_cast %86 : vector<16xf32> to vector<16x1xf32>
    %88 = tpu.reciprocal %87 {approx = true} : vector<16x1xf32> -> vector<16x1xf32>
    %89 = vector.broadcast %88 : vector<16x1xf32> to vector<16x16xf32>
    %90 = arith.mulf %85, %89 : vector<16x16xf32>
    %cst_28 = arith.constant dense<0.000000e+00> : vector<16x16xf32>
    %91 = tpu.matmul %90, %78, %cst_28 {dimension_numbers = #tpu.dot_dimension_numbers<[1], [0], [0], [1], [0, 0, 1, 1], [], []>} : vector<16x16xf32>, vector<16x16xf32>, vector<16x16xf32> -> vector<16x16xf32>
    %92 = tpu.concatenate %75, %91 in 1 : vector<16x16xf32>, vector<16x16xf32> -> vector<16x32xf32>
    %cst_29 = arith.constant dense<0.000000e+00> : vector<16x32xf32>
    %93 = tpu.matmul %92, %46, %cst_29 {dimension_numbers = #tpu.dot_dimension_numbers<[1], [0], [0], [1], [0, 0, 1, 1], [], []>} : vector<16x32xf32>, vector<32x32xf32>, vector<16x32xf32> -> vector<16x32xf32>
    %94 = vector.broadcast %50 : vector<1x32xf32> to vector<16x32xf32>
    %95 = arith.addf %93, %94 : vector<16x32xf32>
    %96 = arith.addf %6, %95 : vector<16x32xf32>
    %cst_30 = arith.constant dense<0.000000e+00> : vector<16xf32>
    %97 = vector.multi_reduction <add>, %96, %cst_30 [1] : vector<16x32xf32> to vector<16xf32>
    %98 = vector.shape_cast %97 : vector<16xf32> to vector<16x1xf32>
    %cst_31 = arith.constant 3.200000e+01 : f32
    %99 = vector.broadcast %cst_31 : f32 to vector<16x1xf32>
    %100 = arith.divf %98, %99 : vector<16x1xf32>
    %101 = vector.broadcast %100 : vector<16x1xf32> to vector<16x32xf32>
    %102 = arith.subf %96, %101 : vector<16x32xf32>
    %103 = arith.mulf %102, %102 : vector<16x32xf32>
    %cst_32 = arith.constant dense<0.000000e+00> : vector<16xf32>
    %104 = vector.multi_reduction <add>, %103, %cst_32 [1] : vector<16x32xf32> to vector<16xf32>
    %105 = vector.shape_cast %104 : vector<16xf32> to vector<16x1xf32>
    %cst_33 = arith.constant 3.200000e+01 : f32
    %106 = vector.broadcast %cst_33 : f32 to vector<16x1xf32>
    %107 = arith.divf %105, %106 : vector<16x1xf32>
    %108 = vector.broadcast %100 : vector<16x1xf32> to vector<16x32xf32>
    %109 = arith.subf %96, %108 : vector<16x32xf32>
    %cst_34 = arith.constant 9.99999974E-6 : f32
    %110 = vector.broadcast %cst_34 : f32 to vector<16x1xf32>
    %111 = arith.addf %107, %110 : vector<16x1xf32>
    %112 = math.rsqrt %111 : vector<16x1xf32>
    %113 = vector.broadcast %112 : vector<16x1xf32> to vector<16x32xf32>
    %114 = arith.mulf %109, %113 : vector<16x32xf32>
    %115 = vector.broadcast %53 : vector<1x32xf32> to vector<16x32xf32>
    %116 = arith.mulf %114, %115 : vector<16x32xf32>
    %117 = vector.broadcast %54 : vector<1x32xf32> to vector<16x32xf32>
    %118 = arith.addf %116, %117 : vector<16x32xf32>
    %cst_35 = arith.constant dense<0.000000e+00> : vector<16x32xf32>
    %119 = tpu.matmul %118, %47, %cst_35 {dimension_numbers = #tpu.dot_dimension_numbers<[1], [0], [0], [1], [0, 0, 1, 1], [], []>} : vector<16x32xf32>, vector<32x32xf32>, vector<16x32xf32> -> vector<16x32xf32>
    %120 = vector.broadcast %51 : vector<1x32xf32> to vector<16x32xf32>
    %121 = arith.addf %119, %120 : vector<16x32xf32>
    %cst_36 = arith.constant 0.000000e+00 : f32
    %122 = vector.broadcast %cst_36 : f32 to vector<16x32xf32>
    %123 = arith.maximumf %121, %122 : vector<16x32xf32>
    %cst_37 = arith.constant dense<0.000000e+00> : vector<16x32xf32>
    %124 = tpu.matmul %123, %48, %cst_37 {dimension_numbers = #tpu.dot_dimension_numbers<[1], [0], [0], [1], [0, 0, 1, 1], [], []>} : vector<16x32xf32>, vector<32x32xf32>, vector<16x32xf32> -> vector<16x32xf32>
    %125 = vector.broadcast %52 : vector<1x32xf32> to vector<16x32xf32>
    %126 = arith.addf %124, %125 : vector<16x32xf32>
    %127 = arith.addf %118, %126 : vector<16x32xf32>
    %cst_38 = arith.constant dense<0.000000e+00> : vector<16xf32>
    %128 = vector.multi_reduction <add>, %127, %cst_38 [1] : vector<16x32xf32> to vector<16xf32>
    %129 = vector.shape_cast %128 : vector<16xf32> to vector<16x1xf32>
    %cst_39 = arith.constant 3.200000e+01 : f32
    %130 = vector.broadcast %cst_39 : f32 to vector<16x1xf32>
    %131 = arith.divf %129, %130 : vector<16x1xf32>
    %132 = vector.broadcast %131 : vector<16x1xf32> to vector<16x32xf32>
    %133 = arith.subf %127, %132 : vector<16x32xf32>
    %134 = arith.mulf %133, %133 : vector<16x32xf32>
    %cst_40 = arith.constant dense<0.000000e+00> : vector<16xf32>
    %135 = vector.multi_reduction <add>, %134, %cst_40 [1] : vector<16x32xf32> to vector<16xf32>
    %136 = vector.shape_cast %135 : vector<16xf32> to vector<16x1xf32>
    %cst_41 = arith.constant 3.200000e+01 : f32
    %137 = vector.broadcast %cst_41 : f32 to vector<16x1xf32>
    %138 = arith.divf %136, %137 : vector<16x1xf32>
    %139 = vector.broadcast %131 : vector<16x1xf32> to vector<16x32xf32>
    %140 = arith.subf %127, %139 : vector<16x32xf32>
    %cst_42 = arith.constant 9.99999974E-6 : f32
    %141 = vector.broadcast %cst_42 : f32 to vector<16x1xf32>
    %142 = arith.addf %138, %141 : vector<16x1xf32>
    %143 = math.rsqrt %142 : vector<16x1xf32>
    %144 = vector.broadcast %143 : vector<16x1xf32> to vector<16x32xf32>
    %145 = arith.mulf %140, %144 : vector<16x32xf32>
    %146 = vector.broadcast %55 : vector<1x32xf32> to vector<16x32xf32>
    %147 = arith.mulf %145, %146 : vector<16x32xf32>
    %148 = vector.broadcast %56 : vector<1x32xf32> to vector<16x32xf32>
    %149 = arith.addf %147, %148 : vector<16x32xf32>
    %c144 = arith.constant 144 : index
    %c0_43 = arith.constant 0 : index
    %150 = vector.load %arg1[%c144, %c0_43] : memref<528x128xf32, #tpu.memory_space<vmem>>, vector<32x96xf32>
    %c176 = arith.constant 176 : index
    %c0_44 = arith.constant 0 : index
    %151 = vector.load %arg1[%c176, %c0_44] : memref<528x128xf32, #tpu.memory_space<vmem>>, vector<32x32xf32>
    %c208 = arith.constant 208 : index
    %c0_45 = arith.constant 0 : index
    %152 = vector.load %arg1[%c208, %c0_45] : memref<528x128xf32, #tpu.memory_space<vmem>>, vector<32x32xf32>
    %c240 = arith.constant 240 : index
    %c0_46 = arith.constant 0 : index
    %153 = vector.load %arg1[%c240, %c0_46] : memref<528x128xf32, #tpu.memory_space<vmem>>, vector<32x32xf32>
    %154 = vector.extract_strided_slice %1 {offsets = [9, 0], sizes = [1, 96], strides = [1, 1]} : vector<18x128xf32> to vector<1x96xf32>
    %155 = vector.extract_strided_slice %1 {offsets = [10, 0], sizes = [1, 32], strides = [1, 1]} : vector<18x128xf32> to vector<1x32xf32>
    %156 = vector.extract_strided_slice %1 {offsets = [11, 0], sizes = [1, 32], strides = [1, 1]} : vector<18x128xf32> to vector<1x32xf32>
    %157 = vector.extract_strided_slice %1 {offsets = [12, 0], sizes = [1, 32], strides = [1, 1]} : vector<18x128xf32> to vector<1x32xf32>
    %158 = vector.extract_strided_slice %1 {offsets = [13, 0], sizes = [1, 32], strides = [1, 1]} : vector<18x128xf32> to vector<1x32xf32>
    %159 = vector.extract_strided_slice %1 {offsets = [14, 0], sizes = [1, 32], strides = [1, 1]} : vector<18x128xf32> to vector<1x32xf32>
    %160 = vector.extract_strided_slice %1 {offsets = [15, 0], sizes = [1, 32], strides = [1, 1]} : vector<18x128xf32> to vector<1x32xf32>
    %161 = vector.extract_strided_slice %1 {offsets = [16, 0], sizes = [1, 32], strides = [1, 1]} : vector<18x128xf32> to vector<1x32xf32>
    %cst_47 = arith.constant dense<0.000000e+00> : vector<16x96xf32>
    %162 = tpu.matmul %149, %150, %cst_47 {dimension_numbers = #tpu.dot_dimension_numbers<[1], [0], [0], [1], [0, 0, 1, 1], [], []>} : vector<16x32xf32>, vector<32x96xf32>, vector<16x96xf32> -> vector<16x96xf32>
    %163 = vector.broadcast %154 : vector<1x96xf32> to vector<16x96xf32>
    %164 = arith.addf %162, %163 : vector<16x96xf32>
    %165 = vector.extract_strided_slice %164 {offsets = [0, 0], sizes = [16, 16], strides = [1, 1]} : vector<16x96xf32> to vector<16x16xf32>
    %166 = vector.extract_strided_slice %164 {offsets = [0, 32], sizes = [16, 16], strides = [1, 1]} : vector<16x96xf32> to vector<16x16xf32>
    %167 = vector.extract_strided_slice %164 {offsets = [0, 64], sizes = [16, 16], strides = [1, 1]} : vector<16x96xf32> to vector<16x16xf32>
    %cst_48 = arith.constant dense<0.000000e+00> : vector<16x16xf32>
    %168 = tpu.matmul %165, %166, %cst_48 {dimension_numbers = #tpu.dot_dimension_numbers<[1], [1], [0], [0], [0, 0, 1, 0], [], []>} : vector<16x16xf32>, vector<16x16xf32>, vector<16x16xf32> -> vector<16x16xf32>
    %169 = arith.addf %168, %44 : vector<16x16xf32>
    %cst_49 = arith.constant dense<0xFF800000> : vector<16xf32>
    %170 = vector.multi_reduction <maximumf>, %169, %cst_49 [1] : vector<16x16xf32> to vector<16xf32>
    %171 = vector.shape_cast %170 : vector<16xf32> to vector<16x1xf32>
    %172 = vector.broadcast %171 : vector<16x1xf32> to vector<16x16xf32>
    %173 = arith.subf %169, %172 : vector<16x16xf32>
    %174 = math.exp %173 : vector<16x16xf32>
    %cst_50 = arith.constant dense<0.000000e+00> : vector<16xf32>
    %175 = vector.multi_reduction <add>, %174, %cst_50 [1] : vector<16x16xf32> to vector<16xf32>
    %176 = vector.shape_cast %175 : vector<16xf32> to vector<16x1xf32>
    %177 = tpu.reciprocal %176 {approx = true} : vector<16x1xf32> -> vector<16x1xf32>
    %178 = vector.broadcast %177 : vector<16x1xf32> to vector<16x16xf32>
    %179 = arith.mulf %174, %178 : vector<16x16xf32>
    %cst_51 = arith.constant dense<0.000000e+00> : vector<16x16xf32>
    %180 = tpu.matmul %179, %167, %cst_51 {dimension_numbers = #tpu.dot_dimension_numbers<[1], [0], [0], [1], [0, 0, 1, 1], [], []>} : vector<16x16xf32>, vector<16x16xf32>, vector<16x16xf32> -> vector<16x16xf32>
    %181 = vector.extract_strided_slice %164 {offsets = [0, 16], sizes = [16, 16], strides = [1, 1]} : vector<16x96xf32> to vector<16x16xf32>
    %182 = vector.extract_strided_slice %164 {offsets = [0, 48], sizes = [16, 16], strides = [1, 1]} : vector<16x96xf32> to vector<16x16xf32>
    %183 = vector.extract_strided_slice %164 {offsets = [0, 80], sizes = [16, 16], strides = [1, 1]} : vector<16x96xf32> to vector<16x16xf32>
    %cst_52 = arith.constant dense<0.000000e+00> : vector<16x16xf32>
    %184 = tpu.matmul %181, %182, %cst_52 {dimension_numbers = #tpu.dot_dimension_numbers<[1], [1], [0], [0], [0, 0, 1, 0], [], []>} : vector<16x16xf32>, vector<16x16xf32>, vector<16x16xf32> -> vector<16x16xf32>
    %185 = arith.addf %184, %44 : vector<16x16xf32>
    %cst_53 = arith.constant dense<0xFF800000> : vector<16xf32>
    %186 = vector.multi_reduction <maximumf>, %185, %cst_53 [1] : vector<16x16xf32> to vector<16xf32>
    %187 = vector.shape_cast %186 : vector<16xf32> to vector<16x1xf32>
    %188 = vector.broadcast %187 : vector<16x1xf32> to vector<16x16xf32>
    %189 = arith.subf %185, %188 : vector<16x16xf32>
    %190 = math.exp %189 : vector<16x16xf32>
    %cst_54 = arith.constant dense<0.000000e+00> : vector<16xf32>
    %191 = vector.multi_reduction <add>, %190, %cst_54 [1] : vector<16x16xf32> to vector<16xf32>
    %192 = vector.shape_cast %191 : vector<16xf32> to vector<16x1xf32>
    %193 = tpu.reciprocal %192 {approx = true} : vector<16x1xf32> -> vector<16x1xf32>
    %194 = vector.broadcast %193 : vector<16x1xf32> to vector<16x16xf32>
    %195 = arith.mulf %190, %194 : vector<16x16xf32>
    %cst_55 = arith.constant dense<0.000000e+00> : vector<16x16xf32>
    %196 = tpu.matmul %195, %183, %cst_55 {dimension_numbers = #tpu.dot_dimension_numbers<[1], [0], [0], [1], [0, 0, 1, 1], [], []>} : vector<16x16xf32>, vector<16x16xf32>, vector<16x16xf32> -> vector<16x16xf32>
    %197 = tpu.concatenate %180, %196 in 1 : vector<16x16xf32>, vector<16x16xf32> -> vector<16x32xf32>
    %cst_56 = arith.constant dense<0.000000e+00> : vector<16x32xf32>
    %198 = tpu.matmul %197, %151, %cst_56 {dimension_numbers = #tpu.dot_dimension_numbers<[1], [0], [0], [1], [0, 0, 1, 1], [], []>} : vector<16x32xf32>, vector<32x32xf32>, vector<16x32xf32> -> vector<16x32xf32>
    %199 = vector.broadcast %155 : vector<1x32xf32> to vector<16x32xf32>
    %200 = arith.addf %198, %199 : vector<16x32xf32>
    %201 = arith.addf %149, %200 : vector<16x32xf32>
    %cst_57 = arith.constant dense<0.000000e+00> : vector<16xf32>
    %202 = vector.multi_reduction <add>, %201, %cst_57 [1] : vector<16x32xf32> to vector<16xf32>
    %203 = vector.shape_cast %202 : vector<16xf32> to vector<16x1xf32>
    %cst_58 = arith.constant 3.200000e+01 : f32
    %204 = vector.broadcast %cst_58 : f32 to vector<16x1xf32>
    %205 = arith.divf %203, %204 : vector<16x1xf32>
    %206 = vector.broadcast %205 : vector<16x1xf32> to vector<16x32xf32>
    %207 = arith.subf %201, %206 : vector<16x32xf32>
    %208 = arith.mulf %207, %207 : vector<16x32xf32>
    %cst_59 = arith.constant dense<0.000000e+00> : vector<16xf32>
    %209 = vector.multi_reduction <add>, %208, %cst_59 [1] : vector<16x32xf32> to vector<16xf32>
    %210 = vector.shape_cast %209 : vector<16xf32> to vector<16x1xf32>
    %cst_60 = arith.constant 3.200000e+01 : f32
    %211 = vector.broadcast %cst_60 : f32 to vector<16x1xf32>
    %212 = arith.divf %210, %211 : vector<16x1xf32>
    %213 = vector.broadcast %205 : vector<16x1xf32> to vector<16x32xf32>
    %214 = arith.subf %201, %213 : vector<16x32xf32>
    %cst_61 = arith.constant 9.99999974E-6 : f32
    %215 = vector.broadcast %cst_61 : f32 to vector<16x1xf32>
    %216 = arith.addf %212, %215 : vector<16x1xf32>
    %217 = math.rsqrt %216 : vector<16x1xf32>
    %218 = vector.broadcast %217 : vector<16x1xf32> to vector<16x32xf32>
    %219 = arith.mulf %214, %218 : vector<16x32xf32>
    %220 = vector.broadcast %158 : vector<1x32xf32> to vector<16x32xf32>
    %221 = arith.mulf %219, %220 : vector<16x32xf32>
    %222 = vector.broadcast %159 : vector<1x32xf32> to vector<16x32xf32>
    %223 = arith.addf %221, %222 : vector<16x32xf32>
    %cst_62 = arith.constant dense<0.000000e+00> : vector<16x32xf32>
    %224 = tpu.matmul %223, %152, %cst_62 {dimension_numbers = #tpu.dot_dimension_numbers<[1], [0], [0], [1], [0, 0, 1, 1], [], []>} : vector<16x32xf32>, vector<32x32xf32>, vector<16x32xf32> -> vector<16x32xf32>
    %225 = vector.broadcast %156 : vector<1x32xf32> to vector<16x32xf32>
    %226 = arith.addf %224, %225 : vector<16x32xf32>
    %cst_63 = arith.constant 0.000000e+00 : f32
    %227 = vector.broadcast %cst_63 : f32 to vector<16x32xf32>
    %228 = arith.maximumf %226, %227 : vector<16x32xf32>
    %cst_64 = arith.constant dense<0.000000e+00> : vector<16x32xf32>
    %229 = tpu.matmul %228, %153, %cst_64 {dimension_numbers = #tpu.dot_dimension_numbers<[1], [0], [0], [1], [0, 0, 1, 1], [], []>} : vector<16x32xf32>, vector<32x32xf32>, vector<16x32xf32> -> vector<16x32xf32>
    %230 = vector.broadcast %157 : vector<1x32xf32> to vector<16x32xf32>
    %231 = arith.addf %229, %230 : vector<16x32xf32>
    %232 = arith.addf %223, %231 : vector<16x32xf32>
    %cst_65 = arith.constant dense<0.000000e+00> : vector<16xf32>
    %233 = vector.multi_reduction <add>, %232, %cst_65 [1] : vector<16x32xf32> to vector<16xf32>
    %234 = vector.shape_cast %233 : vector<16xf32> to vector<16x1xf32>
    %cst_66 = arith.constant 3.200000e+01 : f32
    %235 = vector.broadcast %cst_66 : f32 to vector<16x1xf32>
    %236 = arith.divf %234, %235 : vector<16x1xf32>
    %237 = vector.broadcast %236 : vector<16x1xf32> to vector<16x32xf32>
    %238 = arith.subf %232, %237 : vector<16x32xf32>
    %239 = arith.mulf %238, %238 : vector<16x32xf32>
    %cst_67 = arith.constant dense<0.000000e+00> : vector<16xf32>
    %240 = vector.multi_reduction <add>, %239, %cst_67 [1] : vector<16x32xf32> to vector<16xf32>
    %241 = vector.shape_cast %240 : vector<16xf32> to vector<16x1xf32>
    %cst_68 = arith.constant 3.200000e+01 : f32
    %242 = vector.broadcast %cst_68 : f32 to vector<16x1xf32>
    %243 = arith.divf %241, %242 : vector<16x1xf32>
    %244 = vector.broadcast %236 : vector<16x1xf32> to vector<16x32xf32>
    %245 = arith.subf %232, %244 : vector<16x32xf32>
    %cst_69 = arith.constant 9.99999974E-6 : f32
    %246 = vector.broadcast %cst_69 : f32 to vector<16x1xf32>
    %247 = arith.addf %243, %246 : vector<16x1xf32>
    %248 = math.rsqrt %247 : vector<16x1xf32>
    %249 = vector.broadcast %248 : vector<16x1xf32> to vector<16x32xf32>
    %250 = arith.mulf %245, %249 : vector<16x32xf32>
    %251 = vector.broadcast %160 : vector<1x32xf32> to vector<16x32xf32>
    %252 = arith.mulf %250, %251 : vector<16x32xf32>
    %253 = vector.broadcast %161 : vector<1x32xf32> to vector<16x32xf32>
    %254 = arith.addf %252, %253 : vector<16x32xf32>
    %255 = vector.extract_strided_slice %254 {offsets = [0, 0], sizes = [2, 32], strides = [1, 1]} : vector<16x32xf32> to vector<2x32xf32>
    %256 = vector.extract_strided_slice %254 {offsets = [2, 0], sizes = [2, 32], strides = [1, 1]} : vector<16x32xf32> to vector<2x32xf32>
    %257 = vector.extract_strided_slice %254 {offsets = [4, 0], sizes = [2, 32], strides = [1, 1]} : vector<16x32xf32> to vector<2x32xf32>
    %258 = vector.extract_strided_slice %254 {offsets = [6, 0], sizes = [2, 32], strides = [1, 1]} : vector<16x32xf32> to vector<2x32xf32>
    %259 = vector.extract_strided_slice %254 {offsets = [8, 0], sizes = [2, 32], strides = [1, 1]} : vector<16x32xf32> to vector<2x32xf32>
    %260 = vector.extract_strided_slice %254 {offsets = [10, 0], sizes = [2, 32], strides = [1, 1]} : vector<16x32xf32> to vector<2x32xf32>
    %261 = vector.extract_strided_slice %254 {offsets = [12, 0], sizes = [2, 32], strides = [1, 1]} : vector<16x32xf32> to vector<2x32xf32>
    %262 = vector.extract_strided_slice %254 {offsets = [14, 0], sizes = [2, 32], strides = [1, 1]} : vector<16x32xf32> to vector<2x32xf32>
    %263 = tpu.concatenate %255, %256, %257, %258, %259, %260, %261, %262 in 1 : vector<2x32xf32>, vector<2x32xf32>, vector<2x32xf32>, vector<2x32xf32>, vector<2x32xf32>, vector<2x32xf32>, vector<2x32xf32>, vector<2x32xf32> -> vector<2x256xf32>
    %c272 = arith.constant 272 : index
    %c0_70 = arith.constant 0 : index
    %264 = vector.load %arg1[%c272, %c0_70] : memref<528x128xf32, #tpu.memory_space<vmem>>, vector<256x128xf32>
    %265 = vector.extract_strided_slice %1 {offsets = [17, 0], sizes = [1, 128], strides = [1, 1]} : vector<18x128xf32> to vector<1x128xf32>
    %cst_71 = arith.constant dense<0.000000e+00> : vector<2x128xf32>
    %266 = tpu.matmul %263, %264, %cst_71 {dimension_numbers = #tpu.dot_dimension_numbers<[1], [0], [0], [1], [0, 0, 1, 1], [], []>} : vector<2x256xf32>, vector<256x128xf32>, vector<2x128xf32> -> vector<2x128xf32>
    %267 = vector.broadcast %265 : vector<1x128xf32> to vector<2x128xf32>
    %268 = arith.addf %266, %267 : vector<2x128xf32>
    %cst_72 = arith.constant 0.000000e+00 : f32
    %269 = vector.broadcast %cst_72 : f32 to vector<16x96xf32>
    %270 = tpu.concatenate %254, %269 in 1 : vector<16x32xf32>, vector<16x96xf32> -> vector<16x128xf32>
    %271 = tpu.concatenate %270, %268 in 0 : vector<16x128xf32>, vector<2x128xf32> -> vector<18x128xf32>
    %c0_73 = arith.constant 0 : index
    %c0_74 = arith.constant 0 : index
    %272 = vector.load %arg3[%c0_73, %c0_74] : memref<18x128xf32, #tpu.memory_space<vmem>>, vector<18x128xf32>
    tpu.vector_store %arg3[%c0_73, %c0_74], %271 {strides = array<i32>} : memref<18x128xf32, #tpu.memory_space<vmem>>, vector<18x128xf32>,
    return
  }
}

</mosaic_0001>

<bundles_post_ra>
// kernel: tpu_custom_call.1
= control target key start
LH: loop header
LB: loop body
LE: loop exit
PB: predicated region body
PF: predicated region fallthrough
CT: control target
= control target key end

     0   :  { %8 = vsyncpa [#allocation3], 0  ;;  %s3049_s0 = inlined_call_operand.hbm [shape: f32[16,16], index: 0, kind: input, shape index: {}]   ;;  %s3050_s1 = inlined_call_operand.hbm [shape: f32[528,128], index: 1, kind: input, shape index: {}]   ;;  %s3051_s2 = inlined_call_operand.hbm [shape: f32[18,128], index: 2, kind: input, shape index: {}]   ;;  %s3052_s3 = inlined_call_operand.hbm [shape: f32[18,128], index: 3, kind: output, shape index: {}]  }
   0x1   :  { %9 = vsyncpa [#allocation6], 0 }
   0x2   :  { %10 = vsyncpa [#allocation4], 0  ;;  %s2714_s12 = smov [#allocation5]   ;;  %s2715_s14 = smov [#allocation2]  }
   0x3   :  { %s28_s13 = sshll.u32 %s2714_s12, 4  ;;  %s16_s15 = sshll.u32 %s2715_s14, 4  ;;  %s29_s13 = int_to_ptr.vmem [resolvable:$true] %s28_s13  ;;  %s2748_s15 = int_to_ptr.vmem [resolvable:$true] %s16_s15 }
   0x4   :  { %s2620_s18 = scalar_lea.hbm %s3050_s1, 8448 }
   0x5   :  { %p2621_p0 = scmp.ne.s32.totalorder %s3050_s1, %s2620_s18  ;;  %p2624_p1 = scmp.lt.u32.totalorder %s2620_s18, %s3050_s1 }
   0x7   :  { %p2626_p2 = pnand %p2624_p1, %p2621_p0 }
   0x9   :  { %2629 = shalt.err (!%p2626_p2)
}
   0xa   :  { %s2630_s23 = scalar_lea.vmem %s29_s13, 8448  ;;  %p2635_p4 = scmp.lt.s32.totalorder %s29_s13, %s29_s13 }
   0xb   :  { %p2631_p3 = scmp.ne.s32.totalorder %s29_s13, %s2630_s23  ;;  %p2636_p5 = scmp.lt.s32.totalorder %s2630_s23, %s2630_s23 }
   0xd   :  { %p2637_p6 = por %p2636_p5, %p2635_p4 }
   0xf   :  { %p2638_p7 = pnand %p2637_p6, %p2631_p3 }
  0x11   :  { %2641 = shalt.err (!%p2638_p7)
}
  0x12   :  { %s2716_s24 = smov 128   ;;  %s2717_s25 = smov 8  }
  0x13   :  { %34 = dma.hbm_to_vmem [thread:$0]  %s3050_s1, 8448, %s29_s13, [#allocation6], %s2716_s24, %s2716_s24, %s2717_s25  }
  0x14   :  { %s2642_s30 = scalar_lea.hbm %s3049_s0, 256 }
  0x15   :  { %p2643_p8 = scmp.ne.s32.totalorder %s3049_s0, %s2642_s30  ;;  %p2646_p9 = scmp.lt.u32.totalorder %s2642_s30, %s3049_s0 }
  0x17   :  { %p2648_p10 = pnand %p2646_p9, %p2643_p8 }
  0x19   :  { %2651 = shalt.err (!%p2648_p10)
}
  0x1a   :  { %s2652_s8 = scalar_lea.vmem %s2748_s15, 256  ;;  %p2657_p12 = scmp.lt.s32.totalorder %s2748_s15, %s2748_s15 }
  0x1b   :  { %p2653_p11 = scmp.ne.s32.totalorder %s2748_s15, %s2652_s8  ;;  %p2658_p13 = scmp.lt.s32.totalorder %s2652_s8, %s2652_s8 }
  0x1d   :  { %p2659_p0 = por %p2658_p13, %p2657_p12 }
  0x1f   :  { %p2660_p1 = pnand %p2659_p0, %p2653_p11 }
  0x21   :  { %2663 = shalt.err (!%p2660_p1)
}
  0x22   :  { %22 = dma.hbm_to_vmem [thread:$0]  %s3049_s0, 256, %s2748_s15, [#allocation3], %s2716_s24, %s2716_s24, %s2717_s25  }
  0x23   :  { %s2718_s10 = smov [#allocation7]   ;;  %s2664_s14 = scalar_lea.hbm %s3051_s2, 384 }
  0x24   :  { %s40_s11 = sshll.u32 %s2718_s10, 4  ;;  %p2665_p2 = scmp.ne.s32.totalorder %s3051_s2, %s2664_s14  ;;  %s41_s11 = int_to_ptr.vmem [resolvable:$true] %s40_s11 }
  0x25   :  { %p2668_p3 = scmp.lt.u32.totalorder %s2664_s14, %s3051_s2 }
  0x27   :  { %p2670_p4 = pnand %p2668_p3, %p2665_p2 }
  0x29   :  { %2673 = shalt.err (!%p2670_p4)
}
  0x2a   :  { %s2674_s20 = scalar_lea.vmem %s41_s11, 384  ;;  %p2679_p6 = scmp.lt.s32.totalorder %s41_s11, %s41_s11 }
  0x2b   :  { %p2675_p5 = scmp.ne.s32.totalorder %s41_s11, %s2674_s20  ;;  %p2680_p7 = scmp.lt.s32.totalorder %s2674_s20, %s2674_s20 }
  0x2d   :  { %p2681_p8 = por %p2680_p7, %p2679_p6 }
  0x2f   :  { %p2682_p9 = pnand %p2681_p8, %p2675_p5 }
  0x31   :  { %2685 = shalt.err (!%p2682_p9)
}
  0x32   :  { %46 = dma.hbm_to_vmem [thread:$0]  %s3051_s2, 384, %s41_s11, [#allocation6], %s2716_s24, %s2716_s24, %s2717_s25  }
  0x33   :  { %2708 = dma.done.wait [#allocation3], 256  }
  0x34   :  { %2709 = vsyncadd [#allocation3], 4294967040 }
  0x35   :  { %2710 = dma.done.wait [#allocation6], 8832  }
  0x36   :  { %2711 = vsyncadd [#allocation6], 4294958464  ;;  %vm67_vm0 = vcmask 130048   ;;  %v61_v0 = vld [vmem:[#allocation5] sm:$0xff]  ;;  %v62_v1 = vld [vmem:[#allocation5 + $0x8] sm:$0xff]  ;;  %v63_v11 = vlaneseq  ;;  %vm214_vm1 = vcmask 261120  }
  0x37   :  { %v56_v2 = vld [vmem:[#allocation2] sm:$0xff]  ;;  %v2363_v3 = vpack.c.bf16 %v62_v1, %v61_v0  ;;  %v195_v5 = vld [vmem:[#allocation5 + $0x18] sm:$0xff]  ;;  %v196_v8 = vld [vmem:[#allocation5 + $0x20] sm:$0xff]  ;;  %s2719_s2 = smov 112   ;;  %s2720_s21 = smov 96   ;;  %vm1915_vm5 = vcmask 523264  }
  0x38   :  { %2216 = vmatprep.mubr.msk.f32.mxu1 %vm67_vm0, %v56_v2  ;;  %v194_v4 = vld [vmem:[#allocation5 + $0x10] sm:$0xff]  ;;  %v57_v7 = vld [vmem:[#allocation2 + $0x8] sm:$0xff]  ;;  %v197_v9 = vld [vmem:[#allocation5 + $0x28] sm:$0xff]  ;;  %v2802_v12 = vshrl.u32 %v63_v11, 7  ;;  %s2721_s22 = smov 80   ;;  %v153_v39 = vand.u32 127, %v63_v11 }
  0x39   :  { %v2367_v6 = vpack.c.bf16 %v195_v5, %v194_v4  ;;  %2364 = vmatprep.subr.bf16.mxu1 %v2363_v3  ;;  %v2371_v10 = vpack.c.bf16 %v197_v9, %v196_v8  ;;  %v2807_v14 = vld [vmem:[#allocation7] sm:$0xff]  ;;  %vm2836_vm2 = vmpackc.low %vm67_vm0, %vm67_vm0  ;;  %v2722_v43 = vmov -1e+09   ;;  %s2723_s23 = smov 64   ;;  %s2724_s26 = smov 48   ;;  %vm1917_vm6 = vcmask 785408  }
  0x3a   :  { %2366 = vmatpush3.bf16.msra.mxu1 %v2363_v3  ;;  %v2805_v13 = vsub.s32 0, %v2802_v12  ;;  %v2820_v20 = vsub.s32 1, %v2802_v12  ;;  %v151_v38 = vadd.s32 8, %v2802_v12  ;;  %v182_v41 = vand.u32 1, %v153_v39  ;;  %s2725_s27 = smov 16   ;;  %s2726_s28 = smov 32  }
  0x3b   :  { %2368 = vmatprep.subr.bf16.mxu1 %v2367_v6  ;;  %v158_v42 = vand.u32 1, %v2802_v12  ;;  %s2727_s29 = smov [#allocation8]  }
  0x3c   :  { %v66_v15 = vrot.slane %v2807_v14, %v2805_v13  ;;  %v213_v21 = vrot.slane %v2807_v14, %v2820_v20  ;;  %v165_v40 = vand.u32 1, %v151_v38  ;;  %s2038_s30 = sshll.u32 %s2727_s29, 4  ;;  %s2039_s30 = int_to_ptr.vmem [resolvable:$true] %s2038_s30 }
  0x3d   :  { %2217 = vmatmul.mubr.msk.f32.vlgmr.msra.gmra.mrb[0].mxu1 %vm67_vm0, %v57_v7  ;;  %vm190_vm4 = vcmp.eq.s32.totalorder %v158_v42, %v182_v41  ;;  %v199_v42 = vld [vmem:[#allocation5 + $0x38] sm:$0xff]  ;;  %s2686_s4 = scalar_lea.vmem %s2039_s30, 384  ;;  %p2691_p11 = scmp.lt.s32.totalorder %s2039_s30, %s2039_s30 }
  0x3e   :  { %2370 = vmatpush3.bf16.msra.mxu1 %v2367_v6  ;;  %vm191_vm3 = vcmp.eq.s32.totalorder %v165_v40, %v182_v41  ;;  %v2854_v45 = vsel %vm190_vm4, 0.0, %v2722_v43  ;;  %v198_v41 = vld [vmem:[#allocation5 + $0x30] sm:$0xff]  ;;  %p2687_p10 = scmp.ne.s32.totalorder %s2039_s30, %s2686_s4  ;;  %p2692_p12 = scmp.lt.s32.totalorder %s2686_s4, %s2686_s4 }
  0x3f   :  { %2372 = vmatprep.subr.bf16.mxu1 %v2371_v10  ;;  %v2852_v44 = vsel %vm191_vm3, 0.0, %v2722_v43  ;;  %v2395_v43 = vpack.c.bf16 %v199_v42, %v198_v41 }
  0x40   :  { %p2693_p13 = por %p2692_p12, %p2691_p11 }
  0x42   :  { %2374 = vmatpush3.bf16.msra.mxu1 %v2371_v10  ;;  %p2694_p0 = pnand %p2693_p13, %p2687_p10 }
 0x110   :  { %v2218_v16 = vpop.f32.mrb[0].mxu1 }
 0x111   :  { %v140_v17 = vpop.f32.mrb[1].mxu1  ;;  %v2813_v19 = vadd.f32 %v2218_v16, %v66_v15 }
 0x112   :  { %v2811_v18 = vadd.f32 %v140_v17, %v66_v15 }
 0x114   :  { %2227 = vmatprep.mubr.msk.f32.mxu1 %vm214_vm1, %v2811_v18 }
 0x115   :  { %2228 = vmatmul.mubr.msk.f32.vlgmr.msra.gmra.mrb[2].mxu1 %vm214_vm1, %v2813_v19 }
 0x1e8   :  { %v2229_v22 = vpop.f32.mrb[2].mxu1 }
 0x1e9   :  { %v293_v23 = vadd.f32 %v2229_v22, %v213_v21  ;;  %v287_v24 = vpop.f32.mrb[3].mxu1 }
 0x1ea   :  { %v288_v25 = vadd.f32 %v287_v24, %v213_v21 }
 0x1ec   :  { %494 = vrot.lane.b32.xlu1 %v288_v25, %s2719_s2  ;;  %2234 = vmatprep.mubr.msk.f32.mxu1 %vm67_vm0, %v288_v25  ;;  %v2826_v26 = vpack.i.bf16 %v293_v23, %v288_v25 }
 0x1ee   :  { %2518 = vrot.lane.b32.xlu0 %v2826_v26, %s2720_s21 }
 0x1f0   :  { %496 = vrot.lane.b32.xlu1 %v293_v23, %s2719_s2 }
 0x1f2   :  { %2523 = vrot.lane.b32.xlu0 %v2826_v26, %s2721_s22 }
 0x25e   :  { %v495_v27 = vpop.permute.xlu1 %494 }
 0x25f   :  { %2248 = vmatprep.mubr.msk.f32.mxu0 %vm67_vm0, %v495_v27 }
 0x260   :  { %v2519_v28 = vpop.permute.xlu0 %2518 }
 0x261   :  { %v2521_v29 = vunpack.i.h.bf16 %v2519_v28  ;;  %v2520_v30 = vunpack.i.l.bf16 %v2519_v28 }
 0x262   :  { %v497_v37 = vpop.permute.xlu1 %496 }
 0x263   :  { %v2375_v32 = vpack.c.bf16 %v2521_v29, %v2520_v30 }
 0x264   :  { %v2524_v33 = vpop.permute.xlu0 %2523 }
 0x265   :  { %v2526_v34 = vunpack.i.h.bf16 %v2524_v33  ;;  %v2525_v35 = vunpack.i.l.bf16 %v2524_v33  ;;  %2377 = vmatprep.subr.msk.bf16.mxu1 %vm2836_vm2, %v2375_v32 }
 0x266   :  { %2380 = vmatpush3.bf16.xpose.msk.msra.mxu1 %vm2836_vm2, %v2375_v32 }
 0x267   :  { %v2385_v36 = vpack.c.bf16 %v2526_v34, %v2525_v35 }
 0x269   :  { %2387 = vmatprep.subr.msk.bf16.mxu0 %vm2836_vm2, %v2385_v36 }
 0x26a   :  { %2390 = vmatpush3.bf16.xpose.msk.msra.mxu0 %vm2836_vm2, %v2385_v36 }
 0x26d   :  { %2235 = vmatmul.mubr.msk.f32.vlgmr.msra.gmra.mrb[4].mxu1 %vm67_vm0, %v293_v23 }
 0x271   :  { %2249 = vmatmul.mubr.msk.f32.vlgmr.msra.gmra.mrb[0].mxu0 %vm67_vm0, %v497_v37 }
 0x340   :  { %v2236_v46 = vpop.f32.mrb[4].mxu1 }
 0x341   :  { %v382_v47 = vadd.f32 %v2236_v46, %v2852_v44  ;;  %v376_v48 = vpop.f32.mrb[5].mxu1  ;;  %v200_v46 = vld [vmem:[#allocation5 + $0x40] sm:$0xff] }
 0x342   :  { %v377_v49 = vadd.f32 %v376_v48, %v2854_v45 }
 0x343   :  { %v388_v50 = vsel %vm67_vm0, %v382_v47, -inf }
 0x344   :  { %v2250_v51 = vpop.f32.mrb[0].mxu0  ;;  %389 = vmax.xlane.f32.xlu1 %v388_v50  ;;  %v385_v52 = vsel %vm67_vm0, %v377_v49, -inf }
 0x345   :  { %v576_v53 = vpop.f32.mrb[1].mxu0  ;;  %386 = vmax.xlane.f32.xlu0 %v385_v52  ;;  %v582_v55 = vadd.f32 %v2250_v51, %v2852_v44 }
 0x346   :  { %v577_v54 = vadd.f32 %v576_v53, %v2854_v45 }
 0x347   :  { %v588_v57 = vsel %vm67_vm0, %v582_v55, -inf }
 0x348   :  { %v585_v56 = vsel %vm67_vm0, %v577_v54, -inf }
 0x349   :  { %586 = vmax.xlane.f32.xlu0 %v585_v56 }
 0x34d   :  { %589 = vmax.xlane.f32.xlu0 %v588_v57  ;;  %v706_v57 = vsub.s32 2, %v2802_v12 }
 0x3d1   :  { %v390_v58 = vpop.xlane.xlu1 %389 }
 0x3d2   :  { %v392_v59 = vsub.f32 %v382_v47, %v390_v58  ;;  %v387_v60 = vpop.xlane.xlu0 %386  ;;  %v201_v47 = vld [vmem:[#allocation5 + $0x48] sm:$0xff]  ;;  %v707_v58 = vrot.slane %v2807_v14, %v706_v57 }
 0x3d3   :  { %v391_v61 = vsub.f32 %v377_v49, %v387_v60  ;;  %v2399_v48 = vpack.c.bf16 %v201_v47, %v200_v46  ;;  %v208_v47 = vld [vmem:[#allocation5 + $0x80] sm:$0xff] }
 0x3d4   :  { %v395_v62 = vmul.f32 1.442695, %v392_v59 }
 0x3d5   :  { %v393_v63 = vmul.f32 1.442695, %v391_v61 }
 0x3d6   :  { %2572 = vpow2.f32 %v395_v62  ;;  %v587_v0 = vpop.xlane.xlu0 %586 }
 0x3d7   :  { %2574 = vpow2.f32 %v393_v63  ;;  %v591_v1 = vsub.f32 %v577_v54, %v587_v0 }
 0x3d9   :  { %v593_v2 = vmul.f32 1.442695, %v591_v1 }
 0x3da   :  { %v590_v3 = vpop.xlane.xlu0 %589 }
 0x3db   :  { %2576 = vpow2.f32 %v593_v2  ;;  %v592_v4 = vsub.f32 %v582_v55, %v590_v3 }
 0x3dd   :  { %v595_v5 = vmul.f32 1.442695, %v592_v4 }
 0x3df   :  { %2578 = vpow2.f32 %v595_v5 }
 0x3e0   :  { %v2573_v6 = vpop.eup %2572 }
 0x3e1   :  { %v2575_v7 = vpop.eup %2574  ;;  %v400_v8 = vsel %vm67_vm0, %v2573_v6, 0.0 }
 0x3e2   :  { %401 = vadd.xlane.f32.xlu0 %v400_v8  ;;  %v397_v9 = vsel %vm67_vm0, %v2575_v7, 0.0 }
 0x3e3   :  { %398 = vadd.xlane.f32.xlu1 %v397_v9 }
 0x3e5   :  { %v2577_v10 = vpop.eup %2576 }
 0x3e6   :  { %v597_v11 = vsel %vm67_vm0, %v2577_v10, 0.0 }
 0x3e7   :  { %598 = vadd.xlane.f32.xlu1 %v597_v11 }
 0x3e9   :  { %v2579_v15 = vpop.eup %2578 }
 0x3ea   :  { %v600_v16 = vsel %vm67_vm0, %v2579_v15, 0.0 }
 0x3eb   :  { %601 = vadd.xlane.f32.xlu0 %v600_v16 }
 0x3f8   :  { %2528 = vrot.lane.b32.xlu1 %v2826_v26, %s2723_s23 }
 0x401   :  { %2533 = vrot.lane.b32.xlu0 %v2826_v26, %s2724_s26 }
 0x46f   :  { %v402_v17 = vpop.xlane.xlu0 %401 }
 0x470   :  { %v399_v21 = vpop.xlane.xlu1 %398 }
 0x471   :  { %2580 = vrcp.f32 %v399_v21  ;;  %v205_v21 = vld [vmem:[#allocation5 + $0x68] sm:$0xff] }
 0x472   :  { %2582 = vrcp.f32 %v402_v17  ;;  %v204_v17 = vld [vmem:[#allocation5 + $0x60] sm:$0xff] }
 0x474   :  { %v599_v22 = vpop.xlane.xlu1 %598 }
 0x475   :  { %2584 = vrcp.f32 %v599_v22  ;;  %v2407_v22 = vpack.c.bf16 %v205_v21, %v204_v17  ;;  %v1043_v17 = vld [vmem:[#allocation5 + $0x98] sm:$0xff] }
 0x478   :  { %v2529_v23 = vpop.permute.xlu1 %2528  ;;  %v602_v24 = vpop.xlane.xlu0 %601 }
 0x479   :  { %v2531_v25 = vunpack.i.h.bf16 %v2529_v23  ;;  %v2530_v27 = vunpack.i.l.bf16 %v2529_v23  ;;  %2586 = vrcp.f32 %v602_v24  ;;  %v206_v23 = vld [vmem:[#allocation5 + $0x70] sm:$0xff]  ;;  %v207_v24 = vld [vmem:[#allocation5 + $0x78] sm:$0xff] }
 0x47b   :  { %v2581_v28 = vpop.eup %2580  ;;  %v2381_v29 = vpack.c.bf16 %v2531_v25, %v2530_v27  ;;  %v2411_v25 = vpack.c.bf16 %v207_v24, %v206_v23  ;;  %v1045_v23 = vld [vmem:[#allocation5 + $0xa8] sm:$0xff] }
 0x47c   :  { %v2583_v30 = vpop.eup %2582  ;;  %v2534_v32 = vpop.permute.xlu0 %2533  ;;  %v405_v33 = vmul.f32 %v2581_v28, %v2575_v7 }
 0x47d   :  { %v2536_v34 = vunpack.i.h.bf16 %v2534_v32  ;;  %v2535_v35 = vunpack.i.l.bf16 %v2534_v32  ;;  %2382 = vmatprep.subr.bf16.mxu1 %v2381_v29  ;;  %v406_v36 = vmul.f32 %v2583_v30, %v2573_v6 }
 0x47e   :  { %2384 = vmatpush3.bf16.msra.mxu1 %v2381_v29  ;;  %2241 = vmatprep.mubr.msk.f32.mxu1 %vm67_vm0, %v405_v33 }
 0x47f   :  { %v2585_v26 = vpop.eup %2584  ;;  %v2391_v37 = vpack.c.bf16 %v2536_v34, %v2535_v35  ;;  %v820_v34 = vsub.s32 5, %v2802_v12  ;;  %v826_v35 = vsub.s32 6, %v2802_v12 }
 0x480   :  { %v605_v38 = vmul.f32 %v2585_v26, %v2577_v10 }
 0x481   :  { %2242 = vmatmul.mubr.msk.f32.vlgmr.msra.gmra.mrb[6].mxu1 %vm67_vm0, %v406_v36  ;;  %2392 = vmatprep.subr.bf16.mxu1 %v2391_v37  ;;  %v821_v26 = vrot.slane %v2807_v14, %v820_v34 }
 0x482   :  { %2394 = vmatpush3.bf16.msra.mxu1 %v2391_v37  ;;  %2255 = vmatprep.mubr.msk.f32.mxu1 %vm67_vm0, %v605_v38  ;;  %v827_v38 = vrot.slane %v2807_v14, %v826_v35 }
 0x483   :  { %v2587_v39 = vpop.eup %2586  ;;  %2396 = vmatprep.subr.bf16.mxu1 %v2395_v43 }
 0x484   :  { %v606_v40 = vmul.f32 %v2587_v39, %v2579_v15  ;;  %v203_v15 = vld [vmem:[#allocation5 + $0x58] sm:$0xff] }
 0x486   :  { %2256 = vmatmul.mubr.msk.f32.vlgmr.msra.gmra.mrb[8].mxu1 %vm67_vm0, %v606_v40 }
 0x487   :  { %2398 = vmatpush3.bf16.msra.mxu1 %v2395_v43 }
 0x488   :  { %2400 = vmatprep.subr.bf16.mxu1 %v2399_v48 }
 0x48b   :  { %2402 = vmatpush3.bf16.msra.mxu1 %v2399_v48  ;;  %v209_v48 = vld [vmem:[#allocation5 + $0x88] sm:$0xff] }
 0x48c   :  { %2412 = vmatprep.subr.bf16.mxu1 %v2411_v25 }
 0x554   :  { %v2243_v49 = vpop.f32.mrb[6].mxu1 }
 0x555   :  { %v485_v50 = vpop.f32.mrb[7].mxu1 }
 0x559   :  { %v2257_v51 = vpop.f32.mrb[8].mxu1 }
 0x55a   :  { %v685_v52 = vpop.f32.mrb[9].mxu1 }
 0x55b   :  { %696 = vrot.lane.b32.xlu1 %v685_v52, %s2725_s27 }
 0x55f   :  { %698 = vrot.lane.b32.xlu1 %v2257_v51, %s2725_s27 }
 0x5cd   :  { %v697_v53 = vpop.permute.xlu1 %696 }
 0x5ce   :  { %v702_v54 = vsel %vm67_vm0, %v485_v50, %v697_v53  ;;  %v832_v50 = vsub.s32 3, %v2802_v12 }
 0x5cf   :  { %2266 = vmatprep.mubr.msk.f32.mxu1 %vm214_vm1, %v702_v54 }
 0x5d0   :  { %v833_v51 = vrot.slane %v2807_v14, %v832_v50 }
 0x5d1   :  { %v699_v55 = vpop.permute.xlu1 %698 }
 0x5d2   :  { %v703_v56 = vsel %vm67_vm0, %v2243_v49, %v699_v55  ;;  %v2415_v49 = vpack.c.bf16 %v209_v48, %v208_v47 }
 0x5d3   :  { %2267 = vmatmul.mubr.msk.f32.vlgmr.msra.gmra.mrb[10].mxu1 %vm214_vm1, %v703_v56 }
 0x5d4   :  { %2414 = vmatpush3.bf16.msra.mxu1 %v2411_v25 }
 0x5d5   :  { %2416 = vmatprep.subr.bf16.mxu1 %v2415_v49 }
 0x5d8   :  { %2418 = vmatpush3.bf16.msra.mxu1 %v2415_v49 }
 0x6a6   :  { %v2268_v59 = vpop.f32.mrb[10].mxu1 }
 0x6a7   :  { %v786_v60 = vadd.f32 %v2268_v59, %v707_v58  ;;  %v780_v61 = vpop.f32.mrb[11].mxu1  ;;  %v919_v59 = vsub.s32 4, %v2802_v12 }
 0x6a8   :  { %v781_v62 = vadd.f32 %v780_v61, %v707_v58 }
 0x6a9   :  { %v790_v63 = vadd.f32 %v786_v60, %v2813_v19  ;;  %v920_v60 = vrot.slane %v2807_v14, %v919_v59 }
 0x6aa   :  { %v789_v0 = vadd.f32 %v781_v62, %v2811_v18  ;;  %v202_v18 = vld [vmem:[#allocation5 + $0x50] sm:$0xff] }
 0x6ab   :  { %v794_v1 = vsel %vm214_vm1, %v790_v63, 0.0  ;;  %v2403_v16 = vpack.c.bf16 %v203_v15, %v202_v18 }
 0x6ac   :  { %795 = vadd.xlane.f32.xlu1 %v794_v1  ;;  %v791_v2 = vsel %vm214_vm1, %v789_v0, 0.0 }
 0x6ad   :  { %792 = vadd.xlane.f32.xlu0 %v791_v2  ;;  %2404 = vmatprep.subr.bf16.mxu0 %v2403_v16 }
 0x6ae   :  { %2406 = vmatpush3.bf16.msra.mxu0 %v2403_v16  ;;  %v1042_v16 = vld [vmem:[#allocation5 + $0x90] sm:$0xff] }
 0x6af   :  { %2408 = vmatprep.subr.bf16.mxu0 %v2407_v22  ;;  %v2419_v21 = vpack.c.bf16 %v1043_v17, %v1042_v16 }
 0x6b2   :  { %2410 = vmatpush3.bf16.msra.mxu0 %v2407_v22  ;;  %v1044_v22 = vld [vmem:[#allocation5 + $0xa0] sm:$0xff] }
 0x6b3   :  { %2420 = vmatprep.subr.bf16.mxu0 %v2419_v21  ;;  %v2423_v24 = vpack.c.bf16 %v1045_v23, %v1044_v22 }
 0x739   :  { %v796_v3 = vpop.xlane.xlu1 %795 }
 0x73a   :  { %v799_v4 = vmul.f32 0.03125, %v796_v3  ;;  %v793_v5 = vpop.xlane.xlu0 %792 }
 0x73b   :  { %v798_v6 = vmul.f32 0.03125, %v793_v5 }
 0x73c   :  { %v801_v7 = vsub.f32 %v790_v63, %v799_v4 }
 0x73d   :  { %v800_v8 = vsub.f32 %v789_v0, %v798_v6 }
 0x73e   :  { %v803_v11 = vmul.f32 %v801_v7, %v801_v7 }
 0x73f   :  { %v802_v9 = vmul.f32 %v800_v8, %v800_v8 }
 0x740   :  { %v807_v19 = vsel %vm214_vm1, %v803_v11, 0.0 }
 0x741   :  { %v804_v10 = vsel %vm214_vm1, %v802_v9, 0.0 }
 0x742   :  { %805 = vadd.xlane.f32.xlu0 %v804_v10 }
 0x746   :  { %808 = vadd.xlane.f32.xlu0 %v807_v19 }
 0x7cf   :  { %v806_v27 = vpop.xlane.xlu0 %805 }
 0x7d0   :  { %v810_v28 = vmul.f32 0.03125, %v806_v27 }
 0x7d2   :  { %v812_v29 = vadd.f32 1e-05, %v810_v28 }
 0x7d3   :  { %v809_v30 = vpop.xlane.xlu0 %808 }
 0x7d4   :  { %2588 = vrsqrt.f32 %v812_v29  ;;  %v811_v32 = vmul.f32 0.03125, %v809_v30 }
 0x7d6   :  { %v813_v33 = vadd.f32 1e-05, %v811_v32 }
 0x7d8   :  { %2590 = vrsqrt.f32 %v813_v33  ;;  %v1032_v33 = vsub.s32 7, %v2802_v12 }
 0x7de   :  { %v2589_v36 = vpop.eup %2588 }
 0x7df   :  { %v816_v37 = vmul.f32 %v2589_v36, %v800_v8  ;;  %v1033_v36 = vrot.slane %v2807_v14, %v1032_v33 }
 0x7e1   :  { %v822_v39 = vmul.f32 %v821_v26, %v816_v37 }
 0x7e2   :  { %v2591_v40 = vpop.eup %2590 }
 0x7e3   :  { %v817_v41 = vmul.f32 %v2591_v40, %v801_v7  ;;  %v828_v42 = vadd.f32 %v827_v38, %v822_v39 }
 0x7e5   :  { %v823_v43 = vmul.f32 %v821_v26, %v817_v41  ;;  %2277 = vmatprep.mubr.msk.f32.mxu0 %vm214_vm1, %v828_v42  ;;  %v2917_v26 = vld [vmem:[#allocation7 + $0x8] sm:$0xff] }
 0x7e6   :  { %v1039_v41 = vrot.slane %v2917_v26, %v2805_v13  ;;  %v1061_v14 = vrot.slane %v2917_v26, %v2820_v20 }
 0x7e7   :  { %v829_v46 = vadd.f32 %v827_v38, %v823_v43 }
 0x7e9   :  { %2278 = vmatmul.mubr.msk.f32.vlgmr.msra.gmra.mrb[2].mxu0 %vm214_vm1, %v829_v46 }
 0x7ea   :  { %2422 = vmatpush3.bf16.msra.mxu0 %v2419_v21 }
 0x7eb   :  { %2424 = vmatprep.subr.bf16.mxu0 %v2423_v24 }
 0x7ee   :  { %2426 = vmatpush3.bf16.msra.mxu0 %v2423_v24 }
 0x8bc   :  { %v2279_v52 = vpop.f32.mrb[2].mxu0 }
 0x8bd   :  { %v912_v53 = vadd.f32 %v2279_v52, %v833_v51  ;;  %v906_v54 = vpop.f32.mrb[3].mxu0 }
 0x8be   :  { %v907_v55 = vadd.f32 %v906_v54, %v833_v51 }
 0x8bf   :  { %v916_v58 = vmax.f32 %v912_v53, 0.0 }
 0x8c0   :  { %v915_v56 = vmax.f32 %v907_v55, 0.0 }
 0x8c2   :  { %2288 = vmatprep.mubr.msk.f32.mxu1 %vm214_vm1, %v915_v56 }
 0x8c3   :  { %2289 = vmatmul.mubr.msk.f32.vlgmr.msra.gmra.mrb[12].mxu1 %vm214_vm1, %v916_v58 }
 0x996   :  { %v2290_v61 = vpop.f32.mrb[12].mxu1 }
 0x997   :  { %v999_v62 = vadd.f32 %v2290_v61, %v920_v60  ;;  %v993_v63 = vpop.f32.mrb[13].mxu1 }
 0x998   :  { %v994_v0 = vadd.f32 %v993_v63, %v920_v60 }
 0x999   :  { %v1003_v1 = vadd.f32 %v999_v62, %v829_v46 }
 0x99a   :  { %v1002_v2 = vadd.f32 %v994_v0, %v828_v42 }
 0x99b   :  { %v1007_v3 = vsel %vm214_vm1, %v1003_v1, 0.0 }
 0x99c   :  { %1008 = vadd.xlane.f32.xlu0 %v1007_v3  ;;  %v1004_v4 = vsel %vm214_vm1, %v1002_v2, 0.0 }
 0x99d   :  { %1005 = vadd.xlane.f32.xlu1 %v1004_v4 }
 0xa29   :  { %v1009_v5 = vpop.xlane.xlu0 %1008 }
 0xa2a   :  { %v1011_v6 = vmul.f32 0.03125, %v1009_v5  ;;  %v1006_v7 = vpop.xlane.xlu1 %1005 }
 0xa2b   :  { %v1010_v8 = vmul.f32 0.03125, %v1006_v7 }
 0xa2c   :  { %v1013_v9 = vsub.f32 %v1003_v1, %v1011_v6 }
 0xa2d   :  { %v1012_v10 = vsub.f32 %v1002_v2, %v1010_v8 }
 0xa2e   :  { %v1015_v11 = vmul.f32 %v1013_v9, %v1013_v9 }
 0xa2f   :  { %v1014_v19 = vmul.f32 %v1012_v10, %v1012_v10 }
 0xa30   :  { %v1019_v18 = vsel %vm214_vm1, %v1015_v11, 0.0 }
 0xa31   :  { %1020 = vadd.xlane.f32.xlu0 %v1019_v18  ;;  %v1016_v15 = vsel %vm214_vm1, %v1014_v19, 0.0 }
 0xa32   :  { %1017 = vadd.xlane.f32.xlu1 %v1016_v15 }
 0xabe   :  { %v1021_v25 = vpop.xlane.xlu0 %1020 }
 0xabf   :  { %v1023_v27 = vmul.f32 0.03125, %v1021_v25  ;;  %v1018_v28 = vpop.xlane.xlu1 %1017 }
 0xac0   :  { %v1022_v29 = vmul.f32 0.03125, %v1018_v28 }
 0xac1   :  { %v1025_v30 = vadd.f32 1e-05, %v1023_v27 }
 0xac2   :  { %v1024_v32 = vadd.f32 1e-05, %v1022_v29 }
 0xac3   :  { %2592 = vrsqrt.f32 %v1025_v30 }
 0xac4   :  { %2594 = vrsqrt.f32 %v1024_v32 }
 0xacd   :  { %v2593_v37 = vpop.eup %2592 }
 0xace   :  { %v2595_v38 = vpop.eup %2594  ;;  %v1029_v39 = vmul.f32 %v2593_v37, %v1013_v9 }
 0xacf   :  { %v1028_v40 = vmul.f32 %v2595_v38, %v1012_v10 }
 0xad0   :  { %v1035_v42 = vmul.f32 %v1033_v36, %v1029_v39 }
 0xad1   :  { %v1034_v43 = vmul.f32 %v1033_v36, %v1028_v40 }
 0xad2   :  { %v2926_v47 = vadd.f32 %v1039_v41, %v1035_v42 }
 0xad3   :  { %v2924_v46 = vadd.f32 %v1039_v41, %v1034_v43 }
 0xad5   :  { %2299 = vmatprep.mubr.msk.f32.mxu0 %vm214_vm1, %v2924_v46 }
 0xad6   :  { %2300 = vmatmul.mubr.msk.f32.vlgmr.msra.gmra.mrb[4].mxu0 %vm214_vm1, %v2926_v47 }
 0xba9   :  { %v2301_v48 = vpop.f32.mrb[4].mxu0 }
 0xbaa   :  { %v1140_v49 = vadd.f32 %v2301_v48, %v1061_v14  ;;  %v1134_v51 = vpop.f32.mrb[5].mxu0 }
 0xbab   :  { %v1135_v52 = vadd.f32 %v1134_v51, %v1061_v14 }
 0xbad   :  { %2306 = vmatprep.mubr.msk.f32.mxu1 %vm67_vm0, %v1135_v52  ;;  %v2935_v53 = vpack.i.bf16 %v1140_v49, %v1135_v52 }
 0xbaf   :  { %2538 = vrot.lane.b32.xlu1 %v2935_v53, %s2720_s21 }
 0xbb3   :  { %2543 = vrot.lane.b32.xlu1 %v2935_v53, %s2723_s23 }
 0xbb7   :  { %1341 = vrot.lane.b32.xlu1 %v1135_v52, %s2719_s2 }
 0xbbb   :  { %1343 = vrot.lane.b32.xlu1 %v1140_v49, %s2719_s2 }
 0xc21   :  { %v2539_v54 = vpop.permute.xlu1 %2538 }
 0xc22   :  { %v2541_v55 = vunpack.i.h.bf16 %v2539_v54  ;;  %v2540_v56 = vunpack.i.l.bf16 %v2539_v54 }
 0xc24   :  { %v2427_v58 = vpack.c.bf16 %v2541_v55, %v2540_v56 }
 0xc25   :  { %v2544_v60 = vpop.permute.xlu1 %2543 }
 0xc26   :  { %v2546_v61 = vunpack.i.h.bf16 %v2544_v60  ;;  %v2545_v62 = vunpack.i.l.bf16 %v2544_v60  ;;  %2429 = vmatprep.subr.msk.bf16.mxu1 %vm2836_vm2, %v2427_v58 }
 0xc27   :  { %2432 = vmatpush3.bf16.xpose.msk.msra.mxu1 %vm2836_vm2, %v2427_v58 }
 0xc28   :  { %v2433_v63 = vpack.c.bf16 %v2546_v61, %v2545_v62 }
 0xc29   :  { %v1342_v32 = vpop.permute.xlu1 %1341 }
 0xc2a   :  { %2434 = vmatprep.subr.bf16.mxu0 %v2433_v63 }
 0xc2b   :  { %2436 = vmatpush3.bf16.msra.mxu0 %v2433_v63 }
 0xc2d   :  { %v1344_v36 = vpop.permute.xlu1 %1343 }
 0xc2e   :  { %2307 = vmatmul.mubr.msk.f32.vlgmr.msra.gmra.mrb[14].mxu1 %vm67_vm0, %v1140_v49 }
 0xd01   :  { %v2308_v0 = vpop.f32.mrb[14].mxu1 }
 0xd02   :  { %v1223_v1 = vpop.f32.mrb[15].mxu1  ;;  %v1229_v3 = vadd.f32 %v2308_v0, %v2852_v44 }
 0xd03   :  { %v1224_v2 = vadd.f32 %v1223_v1, %v2854_v45 }
 0xd04   :  { %v1235_v5 = vsel %vm67_vm0, %v1229_v3, -inf }
 0xd05   :  { %v1232_v4 = vsel %vm67_vm0, %v1224_v2, -inf }
 0xd06   :  { %1233 = vmax.xlane.f32.xlu0 %v1232_v4  ;;  %v1046_v4 = vld [vmem:[#allocation5 + $0xb0] sm:$0xff] }
 0xd0a   :  { %1236 = vmax.xlane.f32.xlu0 %v1235_v5  ;;  %v1047_v5 = vld [vmem:[#allocation5 + $0xb8] sm:$0xff] }
 0xd93   :  { %v1234_v6 = vpop.xlane.xlu0 %1233 }
 0xd94   :  { %v1238_v7 = vsub.f32 %v1224_v2, %v1234_v6  ;;  %v2447_v6 = vpack.c.bf16 %v1047_v5, %v1046_v4  ;;  %v1056_v5 = vld [vmem:[#allocation5 + $0x100] sm:$0xff] }
 0xd96   :  { %v1240_v10 = vmul.f32 1.442695, %v1238_v7  ;;  %v1048_v7 = vld [vmem:[#allocation5 + $0xc0] sm:$0xff] }
 0xd97   :  { %v1237_v8 = vpop.xlane.xlu0 %1236 }
 0xd98   :  { %v1239_v9 = vsub.f32 %v1229_v3, %v1237_v8  ;;  %v1049_v8 = vld [vmem:[#allocation5 + $0xc8] sm:$0xff] }
 0xd9a   :  { %v1242_v11 = vmul.f32 1.442695, %v1239_v9  ;;  %v2451_v9 = vpack.c.bf16 %v1049_v8, %v1048_v7 }
 0xd9c   :  { %2596 = vpow2.f32 %v1242_v11 }
 0xd9d   :  { %2598 = vpow2.f32 %v1240_v10 }
 0xda6   :  { %v2597_v19 = vpop.eup %2596 }
 0xda7   :  { %v1247_v18 = vsel %vm67_vm0, %v2597_v19, 0.0  ;;  %v2599_v15 = vpop.eup %2598 }
 0xda8   :  { %1248 = vadd.xlane.f32.xlu0 %v1247_v18  ;;  %v1244_v16 = vsel %vm67_vm0, %v2599_v15, 0.0 }
 0xdac   :  { %1245 = vadd.xlane.f32.xlu0 %v1244_v16 }
 0xdc2   :  { %2548 = vrot.lane.b32.xlu0 %v2935_v53, %s2721_s22 }
 0xe35   :  { %v1249_v17 = vpop.xlane.xlu0 %1248 }
 0xe36   :  { %2600 = vrcp.f32 %v1249_v17  ;;  %v1554_v17 = vrot.slane %v2917_v26, %v706_v57 }
 0xe39   :  { %v1246_v21 = vpop.xlane.xlu0 %1245 }
 0xe3a   :  { %2602 = vrcp.f32 %v1246_v21 }
 0xe3d   :  { %v2549_v22 = vpop.permute.xlu0 %2548 }
 0xe3e   :  { %v2551_v23 = vunpack.i.h.bf16 %v2549_v22  ;;  %v2550_v24 = vunpack.i.l.bf16 %v2549_v22 }
 0xe40   :  { %v2437_v25 = vpack.c.bf16 %v2551_v23, %v2550_v24  ;;  %v2601_v27 = vpop.eup %2600 }
 0xe41   :  { %v1253_v30 = vmul.f32 %v2601_v27, %v2597_v19 }
 0xe42   :  { %2439 = vmatprep.subr.msk.bf16.mxu0 %vm2836_vm2, %v2437_v25 }
 0xe44   :  { %v2603_v28 = vpop.eup %2602 }
 0xe45   :  { %v1252_v29 = vmul.f32 %v2603_v28, %v2599_v15 }
 0xe47   :  { %2313 = vmatprep.mubr.msk.f32.mxu0 %vm67_vm0, %v1252_v29 }
 0xe48   :  { %2314 = vmatmul.mubr.msk.f32.vlgmr.msra.gmra.mrb[6].mxu0 %vm67_vm0, %v1253_v30 }
 0xe49   :  { %2442 = vmatpush3.bf16.xpose.msk.msra.mxu0 %vm2836_vm2, %v2437_v25  ;;  %2320 = vmatprep.mubr.msk.f32.mxu0 %vm67_vm0, %v1342_v32 }
 0xe50   :  { %2321 = vmatmul.mubr.msk.f32.vlgmr.msra.gmra.mrb[8].mxu0 %vm67_vm0, %v1344_v36 }
 0xf1b   :  { %v2315_v37 = vpop.f32.mrb[6].mxu0 }
 0xf1c   :  { %v1332_v38 = vpop.f32.mrb[7].mxu0 }
 0xf23   :  { %v2322_v39 = vpop.f32.mrb[8].mxu0 }
 0xf24   :  { %v1429_v40 = vadd.f32 %v2322_v39, %v2852_v44  ;;  %v1423_v41 = vpop.f32.mrb[9].mxu0 }
 0xf25   :  { %v1424_v42 = vadd.f32 %v1423_v41, %v2854_v45 }
 0xf26   :  { %v1435_v43 = vsel %vm67_vm0, %v1429_v40, -inf }
 0xf27   :  { %1436 = vmax.xlane.f32.xlu0 %v1435_v43  ;;  %v1432_v14 = vsel %vm67_vm0, %v1424_v42, -inf }
 0xf28   :  { %1433 = vmax.xlane.f32.xlu1 %v1432_v14  ;;  %v1052_v14 = vld [vmem:[#allocation5 + $0xe0] sm:$0xff] }
 0xf3d   :  { %2553 = vrot.lane.b32.xlu0 %v2935_v53, %s2724_s26 }
 0xfb4   :  { %v1437_v31 = vpop.xlane.xlu0 %1436 }
 0xfb5   :  { %v1439_v48 = vsub.f32 %v1429_v40, %v1437_v31  ;;  %v1434_v49 = vpop.xlane.xlu1 %1433  ;;  %v1053_v31 = vld [vmem:[#allocation5 + $0xe8] sm:$0xff] }
 0xfb6   :  { %v1438_v51 = vsub.f32 %v1424_v42, %v1434_v49  ;;  %v1051_v42 = vld [vmem:[#allocation5 + $0xd8] sm:$0xff]  ;;  %v1054_v49 = vld [vmem:[#allocation5 + $0xf0] sm:$0xff] }
 0xfb7   :  { %v1442_v52 = vmul.f32 1.442695, %v1439_v48  ;;  %v2459_v48 = vpack.c.bf16 %v1053_v31, %v1052_v14  ;;  %v1924_v31 = vld [vmem:[#allocation5 + $0x120] sm:$0xff] }
 0xfb8   :  { %v1440_v54 = vmul.f32 1.442695, %v1438_v51  ;;  %v2554_v55 = vpop.permute.xlu0 %2553  ;;  %v1055_v51 = vld [vmem:[#allocation5 + $0xf8] sm:$0xff] }
 0xfb9   :  { %v2556_v44 = vunpack.i.h.bf16 %v2554_v55  ;;  %v2555_v56 = vunpack.i.l.bf16 %v2554_v55 }
 0xfba   :  { %2604 = vpow2.f32 %v1440_v54 }
 0xfbb   :  { %v2443_v45 = vpack.c.bf16 %v2556_v44, %v2555_v56  ;;  %2606 = vpow2.f32 %v1442_v52  ;;  %v2463_v52 = vpack.c.bf16 %v1055_v51, %v1054_v49  ;;  %v1942_v49 = vld [vmem:[#allocation5 + $0x1b0] sm:$0xff]  ;;  %v1943_v51 = vld [vmem:[#allocation5 + $0x1b8] sm:$0xff] }
 0xfbd   :  { %2444 = vmatprep.subr.bf16.mxu1 %v2443_v45 }
 0xfbe   :  { %2446 = vmatpush3.bf16.msra.mxu1 %v2443_v45 }
 0xfbf   :  { %2448 = vmatprep.subr.bf16.mxu1 %v2447_v6 }
 0xfc4   :  { %v2605_v58 = vpop.eup %2604 }
 0xfc5   :  { %v1444_v60 = vsel %vm67_vm0, %v2605_v58, 0.0  ;;  %v2607_v61 = vpop.eup %2606 }
 0xfc6   :  { %1445 = vadd.xlane.f32.xlu1 %v1444_v60  ;;  %v1447_v53 = vsel %vm67_vm0, %v2607_v61, 0.0  ;;  %v1667_v60 = vrot.slane %v2917_v26, %v820_v34  ;;  %v1679_v34 = vrot.slane %v2917_v26, %v832_v50 }
 0xfca   :  { %1448 = vadd.xlane.f32.xlu1 %v1447_v53 }
0x1053   :  { %v1446_v62 = vpop.xlane.xlu1 %1445 }
0x1054   :  { %2608 = vrcp.f32 %v1446_v62  ;;  %v1673_v62 = vrot.slane %v2917_v26, %v826_v35 }
0x1057   :  { %v1449_v63 = vpop.xlane.xlu1 %1448 }
0x1058   :  { %2610 = vrcp.f32 %v1449_v63 }
0x105e   :  { %v2609_v0 = vpop.eup %2608 }
0x105f   :  { %v1452_v1 = vmul.f32 %v2609_v0, %v2605_v58 }
0x1061   :  { %2327 = vmatprep.mubr.msk.f32.mxu1 %vm67_vm0, %v1452_v1 }
0x1062   :  { %v2611_v2 = vpop.eup %2610 }
0x1063   :  { %v1453_v3 = vmul.f32 %v2611_v2, %v2607_v61 }
0x1065   :  { %2328 = vmatmul.mubr.msk.f32.vlgmr.msra.gmra.mrb[16].mxu1 %vm67_vm0, %v1453_v3 }
0x1066   :  { %2450 = vmatpush3.bf16.msra.mxu1 %v2447_v6  ;;  %v1057_v6 = vld [vmem:[#allocation5 + $0x108] sm:$0xff] }
0x1067   :  { %2452 = vmatprep.subr.bf16.mxu1 %v2451_v9  ;;  %v2467_v7 = vpack.c.bf16 %v1057_v6, %v1056_v5  ;;  %v1949_v5 = vld [vmem:[#allocation5 + $0x1e8] sm:$0xff] }
0x106a   :  { %2454 = vmatpush3.bf16.msra.mxu1 %v2451_v9 }
0x106b   :  { %2464 = vmatprep.subr.bf16.mxu1 %v2463_v52 }
0x1138   :  { %v2329_v10 = vpop.f32.mrb[16].mxu1 }
0x1139   :  { %v1532_v11 = vpop.f32.mrb[17].mxu1 }
0x113a   :  { %1543 = vrot.lane.b32.xlu1 %v1532_v11, %s2725_s27 }
0x113e   :  { %1545 = vrot.lane.b32.xlu1 %v2329_v10, %s2725_s27 }
0x11ac   :  { %v1544_v19 = vpop.permute.xlu1 %1543 }
0x11ad   :  { %v1549_v18 = vsel %vm67_vm0, %v1332_v38, %v1544_v19 }
0x11ae   :  { %2338 = vmatprep.mubr.msk.f32.mxu1 %vm214_vm1, %v1549_v18  ;;  %v1766_v18 = vrot.slane %v2917_v26, %v919_v59 }
0x11b0   :  { %v1546_v15 = vpop.permute.xlu1 %1545 }
0x11b1   :  { %v1550_v16 = vsel %vm67_vm0, %v2315_v37, %v1546_v15 }
0x11b2   :  { %2339 = vmatmul.mubr.msk.f32.vlgmr.msra.gmra.mrb[18].mxu1 %vm214_vm1, %v1550_v16 }
0x11b3   :  { %2466 = vmatpush3.bf16.msra.mxu1 %v2463_v52 }
0x11b4   :  { %2468 = vmatprep.subr.bf16.mxu1 %v2467_v7 }
0x11b7   :  { %2470 = vmatpush3.bf16.msra.mxu1 %v2467_v7 }
0x1285   :  { %v2340_v21 = vpop.f32.mrb[18].mxu1 }
0x1286   :  { %v1633_v22 = vadd.f32 %v2340_v21, %v1554_v17  ;;  %v1627_v23 = vpop.f32.mrb[19].mxu1 }
0x1287   :  { %v1628_v24 = vadd.f32 %v1627_v23, %v1554_v17 }
0x1288   :  { %v1637_v25 = vadd.f32 %v1633_v22, %v2926_v47 }
0x1289   :  { %v1636_v27 = vadd.f32 %v1628_v24, %v2924_v46  ;;  %v1050_v46 = vld [vmem:[#allocation5 + $0xd0] sm:$0xff] }
0x128a   :  { %v1641_v28 = vsel %vm214_vm1, %v1637_v25, 0.0  ;;  %v2455_v43 = vpack.c.bf16 %v1051_v42, %v1050_v46  ;;  %v1940_v46 = vld [vmem:[#allocation5 + $0x1a0] sm:$0xff]  ;;  %v1941_v42 = vld [vmem:[#allocation5 + $0x1a8] sm:$0xff] }
0x128b   :  { %1642 = vadd.xlane.f32.xlu1 %v1641_v28  ;;  %v1638_v29 = vsel %vm214_vm1, %v1636_v27, 0.0  ;;  %v2475_v14 = vpack.c.bf16 %v1941_v42, %v1940_v46 }
0x128c   :  { %1639 = vadd.xlane.f32.xlu0 %v1638_v29  ;;  %2456 = vmatprep.subr.bf16.mxu0 %v2455_v43 }
0x128d   :  { %2458 = vmatpush3.bf16.msra.mxu0 %v2455_v43 }
0x128e   :  { %2460 = vmatprep.subr.bf16.mxu0 %v2459_v48 }
0x1291   :  { %2462 = vmatpush3.bf16.msra.mxu0 %v2459_v48  ;;  %v1925_v48 = vld [vmem:[#allocation5 + $0x128] sm:$0xff] }
0x1292   :  { %v2477_v52 = vpack.c.bf16 %v1925_v48, %v1924_v31 }
0x1318   :  { %v1643_v30 = vpop.xlane.xlu1 %1642 }
0x1319   :  { %v1645_v32 = vmul.f32 0.03125, %v1643_v30  ;;  %v1640_v36 = vpop.xlane.xlu0 %1639 }
0x131a   :  { %v1644_v37 = vmul.f32 0.03125, %v1640_v36 }
0x131b   :  { %v1647_v38 = vsub.f32 %v1637_v25, %v1645_v32 }
0x131c   :  { %v1646_v57 = vsub.f32 %v1636_v27, %v1644_v37 }
0x131d   :  { %v1649_v41 = vmul.f32 %v1647_v38, %v1647_v38 }
0x131e   :  { %v1648_v39 = vmul.f32 %v1646_v57, %v1646_v57 }
0x131f   :  { %v1653_v47 = vsel %vm214_vm1, %v1649_v41, 0.0 }
0x1320   :  { %v1650_v40 = vsel %vm214_vm1, %v1648_v39, 0.0  ;;  %v1939_v39 = vld [vmem:[#allocation5 + $0x198] sm:$0xff] }
0x1321   :  { %1651 = vadd.xlane.f32.xlu0 %v1650_v40  ;;  %v1922_v40 = vld [vmem:[#allocation5 + $0x110] sm:$0xff] }
0x1325   :  { %1654 = vadd.xlane.f32.xlu0 %v1653_v47  ;;  %v1923_v47 = vld [vmem:[#allocation5 + $0x118] sm:$0xff] }
0x1326   :  { %v2473_v43 = vpack.c.bf16 %v1923_v47, %v1922_v40 }
0x13ae   :  { %v1652_v54 = vpop.xlane.xlu0 %1651 }
0x13af   :  { %v1656_v55 = vmul.f32 0.03125, %v1652_v54  ;;  %v2479_v54 = vpack.c.bf16 %v1943_v51, %v1942_v49 }
0x13b1   :  { %v1658_v44 = vadd.f32 1e-05, %v1656_v55  ;;  %v1926_v55 = vld [vmem:[#allocation5 + $0x130] sm:$0xff] }
0x13b2   :  { %v1655_v56 = vpop.xlane.xlu0 %1654 }
0x13b3   :  { %2612 = vrsqrt.f32 %v1658_v44  ;;  %v1657_v45 = vmul.f32 0.03125, %v1655_v56  ;;  %v1927_v44 = vld [vmem:[#allocation5 + $0x138] sm:$0xff]  ;;  %v1944_v56 = vld [vmem:[#allocation5 + $0x1c0] sm:$0xff] }
0x13b5   :  { %v1659_v58 = vadd.f32 1e-05, %v1657_v45  ;;  %v1945_v45 = vld [vmem:[#allocation5 + $0x1c8] sm:$0xff] }
0x13b7   :  { %2614 = vrsqrt.f32 %v1659_v58  ;;  %v2481_v58 = vpack.c.bf16 %v1927_v44, %v1926_v55 }
0x13bd   :  { %v2613_v61 = vpop.eup %2612 }
0x13be   :  { %v1662_v53 = vmul.f32 %v2613_v61, %v1646_v57  ;;  %v1938_v57 = vld [vmem:[#allocation5 + $0x190] sm:$0xff]  ;;  %v1928_v61 = vld [vmem:[#allocation5 + $0x140] sm:$0xff] }
0x13bf   :  { %v2471_v41 = vpack.c.bf16 %v1939_v39, %v1938_v57  ;;  %v1936_v57 = vld [vmem:[#allocation5 + $0x180] sm:$0xff]  ;;  %v1937_v39 = vld [vmem:[#allocation5 + $0x188] sm:$0xff] }
0x13c0   :  { %v1668_v63 = vmul.f32 %v1667_v60, %v1662_v53  ;;  %v1929_v53 = vld [vmem:[#allocation5 + $0x148] sm:$0xff] }
0x13c1   :  { %v2615_v0 = vpop.eup %2614  ;;  %2472 = vmatprep.subr.bf16.mxu0 %v2471_v41  ;;  %v2501_v41 = vpack.c.bf16 %v1937_v39, %v1936_v57 }
0x13c2   :  { %v1663_v1 = vmul.f32 %v2615_v0, %v1647_v38  ;;  %v1674_v2 = vadd.f32 %v1673_v62, %v1668_v63  ;;  %v1947_v63 = vld [vmem:[#allocation5 + $0x1d8] sm:$0xff]  ;;  %v2485_v0 = vpack.c.bf16 %v1929_v53, %v1928_v61 }
0x13c4   :  { %v1669_v3 = vmul.f32 %v1667_v60, %v1663_v1  ;;  %2349 = vmatprep.mubr.msk.f32.mxu0 %vm214_vm1, %v1674_v2  ;;  %v2483_v60 = vpack.c.bf16 %v1945_v45, %v1944_v56 }
0x13c6   :  { %v1675_v4 = vadd.f32 %v1673_v62, %v1669_v3  ;;  %v1946_v62 = vld [vmem:[#allocation5 + $0x1d0] sm:$0xff]  ;;  %v1931_v3 = vld [vmem:[#allocation5 + $0x158] sm:$0xff] }
0x13c7   :  { %v2487_v1 = vpack.c.bf16 %v1947_v63, %v1946_v62 }
0x13c8   :  { %2350 = vmatmul.mubr.msk.f32.vlgmr.msra.gmra.mrb[10].mxu0 %vm214_vm1, %v1675_v4 }
0x13c9   :  { %2474 = vmatpush3.bf16.msra.mxu0 %v2473_v43 }
0x13ca   :  { %2476 = vmatprep.subr.bf16.mxu0 %v2475_v14 }
0x13cd   :  { %2478 = vmatpush3.bf16.msra.mxu0 %v2477_v52 }
0x13ce   :  { %2480 = vmatprep.subr.bf16.mxu0 %v2479_v54 }
0x13d1   :  { %2482 = vmatpush3.bf16.msra.mxu0 %v2481_v58 }
0x13d2   :  { %2484 = vmatprep.subr.bf16.mxu0 %v2483_v60 }
0x13d5   :  { %2486 = vmatpush3.bf16.msra.mxu0 %v2485_v0 }
0x13d6   :  { %2488 = vmatprep.subr.bf16.mxu0 %v2487_v1 }
0x149b   :  { %v2351_v35 = vpop.f32.mrb[10].mxu0 }
0x149c   :  { %v1758_v8 = vadd.f32 %v2351_v35, %v1679_v34  ;;  %v1752_v9 = vpop.f32.mrb[11].mxu0  ;;  %v1933_v35 = vld [vmem:[#allocation5 + $0x168] sm:$0xff] }
0x149d   :  { %v1753_v10 = vadd.f32 %v1752_v9, %v1679_v34  ;;  %v1932_v34 = vld [vmem:[#allocation5 + $0x160] sm:$0xff] }
0x149e   :  { %v1762_v19 = vmax.f32 %v1758_v8, 0.0  ;;  %v2493_v8 = vpack.c.bf16 %v1933_v35, %v1932_v34 }
0x149f   :  { %v1761_v11 = vmax.f32 %v1753_v10, 0.0 }
0x14a1   :  { %2360 = vmatprep.mubr.msk.f32.mxu1 %vm214_vm1, %v1761_v11 }
0x14a2   :  { %2361 = vmatmul.mubr.msk.f32.vlgmr.msra.gmra.mrb[20].mxu1 %vm214_vm1, %v1762_v19 }
0x1575   :  { %v2362_v15 = vpop.f32.mrb[20].mxu1 }
0x1576   :  { %v1845_v16 = vadd.f32 %v2362_v15, %v1766_v18  ;;  %v1839_v17 = vpop.f32.mrb[21].mxu1 }
0x1577   :  { %v1840_v21 = vadd.f32 %v1839_v17, %v1766_v18  ;;  %v1951_v17 = vld [vmem:[#allocation5 + $0x1f8] sm:$0xff] }
0x1578   :  { %v1849_v22 = vadd.f32 %v1845_v16, %v1675_v4  ;;  %v1948_v4 = vld [vmem:[#allocation5 + $0x1e0] sm:$0xff]  ;;  %v1950_v16 = vld [vmem:[#allocation5 + $0x1f0] sm:$0xff] }
0x1579   :  { %v1848_v50 = vadd.f32 %v1840_v21, %v1674_v2  ;;  %v1930_v2 = vld [vmem:[#allocation5 + $0x150] sm:$0xff]  ;;  %v2491_v7 = vpack.c.bf16 %v1949_v5, %v1948_v4  ;;  %v2495_v21 = vpack.c.bf16 %v1951_v17, %v1950_v16 }
0x157a   :  { %v1853_v23 = vsel %vm214_vm1, %v1849_v22, 0.0  ;;  %v2489_v6 = vpack.c.bf16 %v1931_v3, %v1930_v2 }
0x157b   :  { %1854 = vadd.xlane.f32.xlu1 %v1853_v23  ;;  %v1850_v24 = vsel %vm214_vm1, %v1848_v50, 0.0  ;;  %v3017_v23 = vld [vmem:[#allocation7 + $0x10] sm:$0x3] }
0x157c   :  { %1851 = vadd.xlane.f32.xlu0 %v1850_v24  ;;  %2490 = vmatpush3.bf16.msra.mxu0 %v2489_v6  ;;  %v1957_v4 = vrot.slane %v3017_v23, %v2820_v20 }
0x157d   :  { %2492 = vmatprep.subr.bf16.mxu0 %v2491_v7 }
0x1580   :  { %2494 = vmatpush3.bf16.msra.mxu0 %v2493_v8 }
0x1581   :  { %2496 = vmatprep.subr.bf16.mxu0 %v2495_v21 }
0x1608   :  { %v1855_v25 = vpop.xlane.xlu1 %1854 }
0x1609   :  { %v1857_v27 = vmul.f32 0.03125, %v1855_v25  ;;  %v1852_v28 = vpop.xlane.xlu0 %1851  ;;  %v1879_v25 = vrot.slane %v2917_v26, %v1032_v33 }
0x160a   :  { %v1856_v29 = vmul.f32 0.03125, %v1852_v28  ;;  %v1952_v28 = vld [vmem:[#allocation5 + $0x200] sm:$0xff] }
0x160b   :  { %v3007_v30 = vsub.f32 %v1849_v22, %v1857_v27  ;;  %v1934_v22 = vld [vmem:[#allocation5 + $0x170] sm:$0xff] }
0x160c   :  { %v3009_v32 = vsub.f32 %v1848_v50, %v1856_v29  ;;  %v1935_v50 = vld [vmem:[#allocation5 + $0x178] sm:$0xff]  ;;  %v1953_v29 = vld [vmem:[#allocation5 + $0x208] sm:$0xff] }
0x160d   :  { %v1861_v59 = vmul.f32 %v3007_v30, %v3007_v30  ;;  %v2497_v24 = vpack.c.bf16 %v1935_v50, %v1934_v22 }
0x160e   :  { %v1860_v36 = vmul.f32 %v3009_v32, %v3009_v32 }
0x160f   :  { %v1865_v37 = vsel %vm214_vm1, %v1861_v59, 0.0  ;;  %2498 = vmatpush3.bf16.msra.mxu0 %v2497_v24 }
0x1610   :  { %1866 = vadd.xlane.f32.xlu1 %v1865_v37  ;;  %v1862_v38 = vsel %vm214_vm1, %v1860_v36, 0.0  ;;  %v1885_v36 = vrot.slane %v3017_v23, %v2805_v13 }
0x1611   :  { %1863 = vadd.xlane.f32.xlu0 %v1862_v38  ;;  %v2499_v38 = vpack.c.bf16 %v1953_v29, %v1952_v28 }
0x1613   :  { %2500 = vmatprep.subr.bf16.mxu0 %v2499_v38 }
0x1614   :  { %2502 = vmatpush3.bf16.msra.mxu0 %v2501_v41 }
0x169d   :  { %v1867_v9 = vpop.xlane.xlu1 %1866 }
0x169e   :  { %v1869_v10 = vmul.f32 0.03125, %v1867_v9  ;;  %v1864_v11 = vpop.xlane.xlu0 %1863 }
0x169f   :  { %v1868_v19 = vmul.f32 0.03125, %v1864_v11 }
0x16a0   :  { %v1871_v18 = vadd.f32 1e-05, %v1869_v10 }
0x16a1   :  { %v1870_v15 = vadd.f32 1e-05, %v1868_v19 }
0x16a2   :  { %2616 = vrsqrt.f32 %v1871_v18 }
0x16a3   :  { %2618 = vrsqrt.f32 %v1870_v15 }
0x16ac   :  { %v2617_v27 = vpop.eup %2616 }
0x16ad   :  { %v2619_v59 = vpop.eup %2618  ;;  %v1875_v37 = vmul.f32 %v2617_v27, %v3007_v30 }
0x16ae   :  { %v1874_v40 = vmul.f32 %v2619_v59, %v3009_v32 }
0x16af   :  { %v1881_v12 = vmul.f32 %v1879_v25, %v1875_v37 }
0x16b0   :  { %v1880_v33 = vmul.f32 %v1879_v25, %v1874_v40 }
0x16b1   :  { %v1887_v26 = vadd.f32 %v1885_v36, %v1881_v12 }
0x16b2   :  { %v1886_v47 = vadd.f32 %v1885_v36, %v1880_v33 }
0x16b3   :  { %v1906_v46 = vrot.slane %v1887_v26, 4  ;;  %v1902_v42 = vrot.slane %v1887_v26, 2  ;;  %v2029_v43 = vsel %vm214_vm1, %v1887_v26, 0.0  ;;  %v1910_v49 = vrot.slane %v1887_v26, 6 }
0x16b4   :  { %v1893_v14 = vrot.slane %v1886_v47, 4  ;;  %v1889_v13 = vrot.slane %v1886_v47, 2  ;;  %v2028_v30 = vsel %vm214_vm1, %v1886_v47, 0.0  ;;  %2031 = vst [vmem:[#allocation8 + $0x8] sm:$0xff] %v2029_v43  ;;  %v1897_v32 = vrot.slane %v1886_v47, 6 }
0x16b5   :  { %2030 = vst [vmem:[#allocation8] sm:$0xff] %v2028_v30 }
0x16b6   :  { %v2562_v31 = vpack.i.bf16 %v1893_v14, %v1906_v46  ;;  %v2557_v48 = vpack.i.bf16 %v1889_v13, %v1902_v42  ;;  %v2567_v51 = vpack.i.bf16 %v1897_v32, %v1910_v49 }
0x16b8   :  { %2563 = vrot.lane.b32.xlu0 %v2562_v31, %s2723_s23  ;;  %2558 = vrot.lane.b32.xlu1 %v2557_v48, %s2726_s28 }
0x16bc   :  { %2568 = vrot.lane.b32.xlu1 %v2567_v51, %s2720_s21 }
0x172a   :  { %v2564_v52 = vpop.permute.xlu0 %2563  ;;  %v2559_v54 = vpop.permute.xlu1 %2558 }
0x172b   :  { %v2561_v55 = vunpack.i.h.bf16 %v2559_v54  ;;  %v2560_v44 = vunpack.i.l.bf16 %v2559_v54  ;;  %v2566_v56 = vunpack.i.h.bf16 %v2564_v52  ;;  %v2565_v45 = vunpack.i.l.bf16 %v2564_v52 }
0x172d   :  { %v1914_v58 = vsel %vm214_vm1, %v1886_v47, %v2561_v55  ;;  %v1919_v60 = vsel %vm214_vm1, %v1887_v26, %v2560_v44 }
0x172e   :  { %v2569_v61 = vpop.permute.xlu1 %2568  ;;  %v1920_v63 = vsel %vm1915_vm5, %v1919_v60, %v2565_v45  ;;  %v1916_v0 = vsel %vm1915_vm5, %v1914_v58, %v2566_v56 }
0x172f   :  { %v2571_v53 = vunpack.i.h.bf16 %v2569_v61  ;;  %v2570_v62 = vunpack.i.l.bf16 %v2569_v61 }
0x1731   :  { %v1921_v1 = vsel %vm1917_vm6, %v1920_v63, %v2570_v62  ;;  %v1918_v2 = vsel %vm1917_vm6, %v1916_v0, %v2571_v53 }
0x1732   :  { %2022 = vmatprep.mubr.f32.mxu0 %v1921_v1 }
0x1733   :  { %2023 = vmatmul.mubr.f32.vlgmr.msra.gmra.mrb[12].mxu0 %v1918_v2 }
0x1806   :  { %v2209_v3 = vpop.f32.mrb[12].mxu0 }
0x1807   :  { %v2210_v5 = vpop.f32.mrb[13].mxu0 }
0x1808   :  { %v2211_v6 = vadd.f32 %v2210_v5, %v2209_v3 }
0x180a   :  { %v2025_v7 = vadd.f32 %v2211_v6, %v1957_v4 }
0x180c   :  { %2032 = vst [vmem:[#allocation8 + $0x10] sm:$0x3] %v2025_v7 }
0x180d   :  { %2697 = shalt.err (!%p2694_p0)
}
0x180e   :  { %s2698_s7 = scalar_lea.hbm %s3052_s3, 384 }
0x180f   :  { %p2699_p1 = scmp.ne.s32.totalorder %s3052_s3, %s2698_s7  ;;  %p2702_p2 = scmp.lt.u32.totalorder %s2698_s7, %s3052_s3 }
0x1811   :  { %p2704_p3 = pnand %p2702_p2, %p2699_p1 }
0x1813   :  { %2707 = shalt.err (!%p2704_p3)
}
0x1814   :  { %2044 = dma.vmem_to_hbm [thread:$0]  %s2039_s30, 384, %s3052_s3, [#allocation4], %s2716_s24, %s2716_s24, %s2717_s25  }
0x1815   :  { %2712 = dma.done.wait [#allocation4], 384  }
0x1816   :  { %2713 = vsyncadd [#allocation4], 4294966912 }
0x1817   :  { %2048 = vsyncpa [#allocation3], 1 }
0x1818   :  { %2049 = vsyncpa [#allocation6], 1 }
0x1819   :  { %2050 = vsyncpa [#allocation4], 1 }

</bundles_post_ra>
